<compile_context>
chip_gen: v7x
topology: tpu7x:2x2x1
jax: 0.10.0
libtpu: 0.0.40
codegen_flags: <defaults>
</compile_context>

<pallas_src>
import functools

import jax
import jax.numpy as jnp
from jax.experimental import pallas as pl
from jax.experimental.pallas import tpu as pltpu


def _grpo_kernel(x_ref,
                 wih0_ref, whh_ref, bgi0_ref, bhn0_ref,
                 wih1_ref, bgi1_ref, bhn1_ref,
                 whead_ref, bhead_ref,
                 out_ref,
                 *, hidden_dim, batch, seq_len):
    H = hidden_dim
    B = batch          # already padded to a multiple of 8 sublanes
    T = seq_len
    G = 3 * H

    # ---- loop-invariant loads / broadcasts (hoisted out of the recurrence) ----
    whh = whh_ref[...]                              # [2H, 6H] blockdiag(whh0^T, whh1^T)
    wih1 = wih1_ref[...]                            # [H, 3H]
    bgi1 = bgi1_ref[...]                            # [1, 3H]
    bhn0 = jnp.broadcast_to(bhn0_ref[...], (B, H))
    brz1 = jnp.broadcast_to(bgi1[:, :2 * H], (B, 2 * H))
    bin1 = jnp.broadcast_to(bgi1[:, 2 * H:], (B, H))
    bhn1 = jnp.broadcast_to(bhn1_ref[...], (B, H))

    # ---- layer-0 input projection for the whole sequence: ONE MXU call ----
    # x_ref is time-major flattened [T*B, D]; bgi0 already contains b_ih0 plus
    # the r/z parts of b_hh0 (folded in the wrapper).
    gi0_all = (jnp.dot(x_ref[...], wih0_ref[...],
                       preferred_element_type=jnp.float32)
               + bgi0_ref[...])                     # [T*B, 3H]

    h0 = jnp.zeros((B, H), jnp.float32)
    h1 = jnp.zeros((B, H), jnp.float32)

    # Fully static unroll (T is small) — hidden state stays in registers and
    # the scheduler can overlap layer-1 of step t with layer-0 of step t+1.
    for t in range(T):
        # Sublane-aligned per-step slice (B is a multiple of 8).
        gi0 = gi0_all[t * B:(t + 1) * B, :]          # [B, 3H], biases pre-folded

        # ---- fused recurrent matmul: [gh0 | gh1] in one MXU dispatch ----
        hcat = jnp.concatenate([h0, h1], axis=1)     # [B, 2H]
        gh = jnp.dot(hcat, whh, preferred_element_type=jnp.float32)  # [B, 6H]
        gh0 = gh[:, :G]
        gh1 = gh[:, G:]

        # ---- layer 0 ----
        rz0 = jax.nn.sigmoid(gi0[:, :2 * H] + gh0[:, :2 * H])
        r0, z0 = rz0[:, :H], rz0[:, H:]
        n0 = jnp.tanh(gi0[:, 2 * H:] + r0 * (gh0[:, 2 * H:] + bhn0))
        h0 = (1.0 - z0) * n0 + z0 * h0

        # ---- layer 1 (consumes layer-0 output; dropout identity in eval) ----
        gi1 = jnp.dot(h0, wih1, preferred_element_type=jnp.float32)  # [B, 3H]
        rz1 = jax.nn.sigmoid(gi1[:, :2 * H] + gh1[:, :2 * H] + brz1)
        r1, z1 = rz1[:, :H], rz1[:, H:]
        n1 = jnp.tanh(gi1[:, 2 * H:] + bin1 + r1 * (gh1[:, 2 * H:] + bhn1))
        h1 = (1.0 - z1) * n1 + z1 * h1

    # ---- fused, lane-dense output heads: single matmul, unmasked store ----
    out_ref[...] = (jnp.dot(h1, whead_ref[...],
                            preferred_element_type=jnp.float32)
                    + bhead_ref[...])


def forecasting_grpo_forward(x, params):
    """x: [B, T, D] (batch_first, like the PyTorch module). Returns (forecast, policy)."""
    B, T, D = x.shape
    H = params["w_hh0"].shape[0] // 3
    P = params["w_fc"].shape[0]

    # Sublane-align the batch (8) and lane-align the fused head output (128).
    B_pad = ((B + 7) // 8) * 8
    OUT_W = max(128, ((P + 1 + 127) // 128) * 128)

    x_p = x if B_pad == B else jnp.pad(x, ((0, B_pad - B), (0, 0), (0, 0)))

    # Time-major, flattened to [T*B_pad, D] so the kernel can hoist the layer-0
    # input projection into a single matmul over the whole sequence.
    # TODO(synk): at production T*B, stream x behind a grid over T instead of
    #             materializing this wrapper-side transpose (extra HBM pass).
    x_flat = jnp.transpose(x_p, (1, 0, 2)).reshape(T * B_pad, D)

    # Pre-transpose weights to [in, 3H] and pre-merge r/z biases:
    #   b_gi = [b_ir + b_hr, b_iz + b_hz, b_in]
    # (the n-gate hh bias must stay separate: n = tanh(i_n + b_in + r*(h_n + b_hn)))
    def fold_bias(b_ih, b_hh):
        return jnp.concatenate([b_ih[:2 * H] + b_hh[:2 * H], b_ih[2 * H:]])

    b_gi0 = fold_bias(params["b_ih0"], params["b_hh0"]).reshape(1, 3 * H)
    b_hn0 = params["b_hh0"][2 * H:].reshape(1, H)
    b_gi1 = fold_bias(params["b_ih1"], params["b_hh1"]).reshape(1, 3 * H)
    b_hn1 = params["b_hh1"][2 * H:].reshape(1, H)

    # Fused recurrent weight: blockdiag(W_hh0^T, W_hh1^T) -> [2H, 6H], so both
    # per-step h-matmuls become one MXU dispatch (zero flops are free — MXU is
    # nowhere near saturated at this size).
    zeros_h = jnp.zeros((H, 3 * H), jnp.float32)
    w_hh_fused = jnp.concatenate(
        [jnp.concatenate([params["w_hh0"].T, zeros_h], axis=1),
         jnp.concatenate([zeros_h, params["w_hh1"].T], axis=1)], axis=0)

    # Fused heads, zero-padded to lane-dense width OUT_W: one [H, OUT_W] weight.
    w_head = jnp.concatenate([params["w_fc"].T, params["w_p"].T], axis=1)
    w_head = jnp.pad(w_head, ((0, 0), (0, OUT_W - (P + 1))))
    b_head = jnp.concatenate([params["b_fc"], params["b_p"]])
    b_head = jnp.pad(b_head, (0, OUT_W - (P + 1))).reshape(1, OUT_W)

    args = (
        x_flat,
        params["w_ih0"].T, w_hh_fused, b_gi0, b_hn0,
        params["w_ih1"].T, b_gi1, b_hn1,
        w_head, b_head,
    )

    vmem = functools.partial(pl.BlockSpec, memory_space=pltpu.MemorySpace.VMEM)
    kernel = functools.partial(_grpo_kernel, hidden_dim=H, batch=B_pad, seq_len=T)

    # TODO(synk): for realistic B, add grid=(B_pad // block_b,) with
    #             dimension_semantics=("parallel",) so v7x's second TensorCore
    #             gets half the batch.
    out = pl.pallas_call(
        kernel,
        out_shape=jax.ShapeDtypeStruct((B_pad, OUT_W), jnp.float32),
        in_specs=[vmem() for _ in args],
        out_specs=vmem(),
    )(*args)

    forecast = out[:B, :P]
    policy = out[:B, P:P + 1]
    return forecast, policy


def reference_forward(x, params):
    """Pure-JAX reference of the PyTorch forward (eval mode)."""
    B, T, D = x.shape
    H = params["w_hh0"].shape[0] // 3

    def cell(x_t, h, w_ih, w_hh, b_ih, b_hh):
        gi = x_t @ w_ih.T + b_ih
        gh = h @ w_hh.T + b_hh
        i_r, i_z, i_n = jnp.split(gi, 3, axis=-1)
        h_r, h_z, h_n = jnp.split(gh, 3, axis=-1)
        r = jax.nn.sigmoid(i_r + h_r)
        z = jax.nn.sigmoid(i_z + h_z)
        n = jnp.tanh(i_n + r * h_n)
        return (1.0 - z) * n + z * h

    h0 = jnp.zeros((B, H), jnp.float32)
    h1 = jnp.zeros((B, H), jnp.float32)
    for t in range(T):
        h0 = cell(x[:, t, :], h0, params["w_ih0"], params["w_hh0"],
                  params["b_ih0"], params["b_hh0"])
        h1 = cell(h0, h1, params["w_ih1"], params["w_hh1"],
                  params["b_ih1"], params["b_hh1"])
    forecast = h1 @ params["w_fc"].T + params["b_fc"]
    policy = h1 @ params["w_p"].T + params["b_p"]
    return forecast, policy


def init_params(key, input_dim, hidden_dim, num_products):
    ks = jax.random.split(key, 12)
    s = 0.1
    return {
        # layer 0: W_ih [3H, D], W_hh [3H, H], biases [3H]
        "w_ih0": s * jax.random.normal(ks[0], (3 * hidden_dim, input_dim), jnp.float32),
        "w_hh0": s * jax.random.normal(ks[1], (3 * hidden_dim, hidden_dim), jnp.float32),
        "b_ih0": s * jax.random.normal(ks[2], (3 * hidden_dim,), jnp.float32),
        "b_hh0": s * jax.random.normal(ks[3], (3 * hidden_dim,), jnp.float32),
        # layer 1: W_ih [3H, H]
        "w_ih1": s * jax.random.normal(ks[4], (3 * hidden_dim, hidden_dim), jnp.float32),
        "w_hh1": s * jax.random.normal(ks[5], (3 * hidden_dim, hidden_dim), jnp.float32),
        "b_ih1": s * jax.random.normal(ks[6], (3 * hidden_dim,), jnp.float32),
        "b_hh1": s * jax.random.normal(ks[7], (3 * hidden_dim,), jnp.float32),
        # heads
        "w_fc": s * jax.random.normal(ks[8], (num_products, hidden_dim), jnp.float32),
        "b_fc": s * jax.random.normal(ks[9], (num_products,), jnp.float32),
        "w_p": s * jax.random.normal(ks[10], (1, hidden_dim), jnp.float32),
        "b_p": s * jax.random.normal(ks[11], (1,), jnp.float32),
    }


if __name__ == "__main__":
    B, T, D, H, P = 4, 8, 8, 32, 8   # batch, seq, input_dim, hidden_dim, num_products

    key = jax.random.PRNGKey(0)
    k_x, k_p = jax.random.split(key)
    x = jax.random.normal(k_x, (B, T, D), jnp.float32)
    params = init_params(k_p, D, H, P)

    fwd = jax.jit(forecasting_grpo_forward)
    forecast, policy = fwd(x, params)
    jax.block_until_ready((forecast, policy))

    ref_forecast, ref_policy = reference_forward(x, params)
    assert forecast.shape == (B, P) and policy.shape == (B, 1)
    assert jnp.allclose(forecast, ref_forecast, atol=1e-5, rtol=1e-5)
    assert jnp.allclose(policy, ref_policy, atol=1e-5, rtol=1e-5)

    print("KERNEL_OK")
</pallas_src>

<mosaic_0001>
module attributes {stable_mosaic.version = 11 : i64} {
  func.func @_grpo_kernel(%arg0: memref<64x8xf32, #tpu.memory_space<vmem>>, %arg1: memref<8x96xf32, #tpu.memory_space<vmem>>, %arg2: memref<64x192xf32, #tpu.memory_space<vmem>>, %arg3: memref<1x96xf32, #tpu.memory_space<vmem>>, %arg4: memref<1x32xf32, #tpu.memory_space<vmem>>, %arg5: memref<32x96xf32, #tpu.memory_space<vmem>>, %arg6: memref<1x96xf32, #tpu.memory_space<vmem>>, %arg7: memref<1x32xf32, #tpu.memory_space<vmem>>, %arg8: memref<32x128xf32, #tpu.memory_space<vmem>>, %arg9: memref<1x128xf32, #tpu.memory_space<vmem>>, %arg10: memref<8x128xf32, #tpu.memory_space<vmem>>) attributes {dimension_semantics = [], scalar_prefetch = 0 : i64, scratch_operands = 0 : i64, tpu.core_type = #tpu.core_type<tc>} {
    %c0 = arith.constant 0 : index
    %c0_0 = arith.constant 0 : index
    %0 = vector.load %arg2[%c0, %c0_0] : memref<64x192xf32, #tpu.memory_space<vmem>>, vector<64x192xf32>
    %c0_1 = arith.constant 0 : index
    %c0_2 = arith.constant 0 : index
    %1 = vector.load %arg5[%c0_1, %c0_2] : memref<32x96xf32, #tpu.memory_space<vmem>>, vector<32x96xf32>
    %c0_3 = arith.constant 0 : index
    %c0_4 = arith.constant 0 : index
    %2 = vector.load %arg6[%c0_3, %c0_4] : memref<1x96xf32, #tpu.memory_space<vmem>>, vector<1x96xf32>
    %c0_5 = arith.constant 0 : index
    %c0_6 = arith.constant 0 : index
    %3 = vector.load %arg4[%c0_5, %c0_6] : memref<1x32xf32, #tpu.memory_space<vmem>>, vector<1x32xf32>
    %4 = vector.shape_cast %3 : vector<1x32xf32> to vector<1x32xf32>
    %5 = vector.broadcast %4 : vector<1x32xf32> to vector<8x32xf32>
    %6 = vector.extract_strided_slice %2 {offsets = [0, 0], sizes = [1, 64], strides = [1, 1]} : vector<1x96xf32> to vector<1x64xf32>
    %7 = vector.shape_cast %6 : vector<1x64xf32> to vector<1x64xf32>
    %8 = vector.broadcast %7 : vector<1x64xf32> to vector<8x64xf32>
    %9 = vector.extract_strided_slice %2 {offsets = [0, 64], sizes = [1, 32], strides = [1, 1]} : vector<1x96xf32> to vector<1x32xf32>
    %10 = vector.shape_cast %9 : vector<1x32xf32> to vector<1x32xf32>
    %11 = vector.broadcast %10 : vector<1x32xf32> to vector<8x32xf32>
    %c0_7 = arith.constant 0 : index
    %c0_8 = arith.constant 0 : index
    %12 = vector.load %arg7[%c0_7, %c0_8] : memref<1x32xf32, #tpu.memory_space<vmem>>, vector<1x32xf32>
    %13 = vector.shape_cast %12 : vector<1x32xf32> to vector<1x32xf32>
    %14 = vector.broadcast %13 : vector<1x32xf32> to vector<8x32xf32>
    %c0_9 = arith.constant 0 : index
    %c0_10 = arith.constant 0 : index
    %15 = vector.load %arg0[%c0_9, %c0_10] : memref<64x8xf32, #tpu.memory_space<vmem>>, vector<64x8xf32>
    %c0_11 = arith.constant 0 : index
    %c0_12 = arith.constant 0 : index
    %16 = vector.load %arg1[%c0_11, %c0_12] : memref<8x96xf32, #tpu.memory_space<vmem>>, vector<8x96xf32>
    %cst = arith.constant dense<0.000000e+00> : vector<64x96xf32>
    %17 = tpu.matmul %15, %16, %cst {dimension_numbers = #tpu.dot_dimension_numbers<[1], [0], [0], [1], [0, 0, 1, 1], [], []>} : vector<64x8xf32>, vector<8x96xf32>, vector<64x96xf32> -> vector<64x96xf32>
    %c0_13 = arith.constant 0 : index
    %c0_14 = arith.constant 0 : index
    %18 = vector.load %arg3[%c0_13, %c0_14] : memref<1x96xf32, #tpu.memory_space<vmem>>, vector<1x96xf32>
    %19 = vector.broadcast %18 : vector<1x96xf32> to vector<64x96xf32>
    %20 = arith.addf %17, %19 : vector<64x96xf32>
    %cst_15 = arith.constant 0.000000e+00 : f32
    %21 = vector.broadcast %cst_15 : f32 to vector<8x32xf32>
    %cst_16 = arith.constant 0.000000e+00 : f32
    %22 = vector.broadcast %cst_16 : f32 to vector<8x32xf32>
    %23 = vector.extract_strided_slice %20 {offsets = [0, 0], sizes = [8, 96], strides = [1, 1]} : vector<64x96xf32> to vector<8x96xf32>
    %24 = tpu.concatenate %21, %22 in 1 : vector<8x32xf32>, vector<8x32xf32> -> vector<8x64xf32>
    %cst_17 = arith.constant dense<0.000000e+00> : vector<8x192xf32>
    %25 = tpu.matmul %24, %0, %cst_17 {dimension_numbers = #tpu.dot_dimension_numbers<[1], [0], [0], [1], [0, 0, 1, 1], [], []>} : vector<8x64xf32>, vector<64x192xf32>, vector<8x192xf32> -> vector<8x192xf32>
    %26 = vector.extract_strided_slice %25 {offsets = [0, 0], sizes = [8, 96], strides = [1, 1]} : vector<8x192xf32> to vector<8x96xf32>
    %27 = vector.extract_strided_slice %25 {offsets = [0, 96], sizes = [8, 96], strides = [1, 1]} : vector<8x192xf32> to vector<8x96xf32>
    %28 = vector.extract_strided_slice %23 {offsets = [0, 0], sizes = [8, 64], strides = [1, 1]} : vector<8x96xf32> to vector<8x64xf32>
    %29 = vector.extract_strided_slice %26 {offsets = [0, 0], sizes = [8, 64], strides = [1, 1]} : vector<8x96xf32> to vector<8x64xf32>
    %30 = arith.addf %28, %29 : vector<8x64xf32>
    %31 = arith.negf %30 : vector<8x64xf32>
    %32 = math.exp %31 : vector<8x64xf32>
    %cst_18 = arith.constant 1.000000e+00 : f32
    %33 = vector.broadcast %cst_18 : f32 to vector<8x64xf32>
    %34 = arith.addf %33, %32 : vector<8x64xf32>
    %35 = arith.divf %33, %34 : vector<8x64xf32>
    %36 = vector.extract_strided_slice %35 {offsets = [0, 0], sizes = [8, 32], strides = [1, 1]} : vector<8x64xf32> to vector<8x32xf32>
    %37 = vector.extract_strided_slice %35 {offsets = [0, 32], sizes = [8, 32], strides = [1, 1]} : vector<8x64xf32> to vector<8x32xf32>
    %38 = vector.extract_strided_slice %23 {offsets = [0, 64], sizes = [8, 32], strides = [1, 1]} : vector<8x96xf32> to vector<8x32xf32>
    %39 = vector.extract_strided_slice %26 {offsets = [0, 64], sizes = [8, 32], strides = [1, 1]} : vector<8x96xf32> to vector<8x32xf32>
    %40 = arith.addf %39, %5 : vector<8x32xf32>
    %41 = arith.mulf %36, %40 : vector<8x32xf32>
    %42 = arith.addf %38, %41 : vector<8x32xf32>
    %43 = math.tanh %42 : vector<8x32xf32>
    %cst_19 = arith.constant 1.000000e+00 : f32
    %44 = vector.broadcast %cst_19 : f32 to vector<8x32xf32>
    %45 = arith.subf %44, %37 : vector<8x32xf32>
    %46 = arith.mulf %45, %43 : vector<8x32xf32>
    %47 = arith.mulf %37, %21 : vector<8x32xf32>
    %48 = arith.addf %46, %47 : vector<8x32xf32>
    %cst_20 = arith.constant dense<0.000000e+00> : vector<8x96xf32>
    %49 = tpu.matmul %48, %1, %cst_20 {dimension_numbers = #tpu.dot_dimension_numbers<[1], [0], [0], [1], [0, 0, 1, 1], [], []>} : vector<8x32xf32>, vector<32x96xf32>, vector<8x96xf32> -> vector<8x96xf32>
    %50 = vector.extract_strided_slice %49 {offsets = [0, 0], sizes = [8, 64], strides = [1, 1]} : vector<8x96xf32> to vector<8x64xf32>
    %51 = vector.extract_strided_slice %27 {offsets = [0, 0], sizes = [8, 64], strides = [1, 1]} : vector<8x96xf32> to vector<8x64xf32>
    %52 = arith.addf %50, %51 : vector<8x64xf32>
    %53 = arith.addf %52, %8 : vector<8x64xf32>
    %54 = arith.negf %53 : vector<8x64xf32>
    %55 = math.exp %54 : vector<8x64xf32>
    %cst_21 = arith.constant 1.000000e+00 : f32
    %56 = vector.broadcast %cst_21 : f32 to vector<8x64xf32>
    %57 = arith.addf %56, %55 : vector<8x64xf32>
    %58 = arith.divf %56, %57 : vector<8x64xf32>
    %59 = vector.extract_strided_slice %58 {offsets = [0, 0], sizes = [8, 32], strides = [1, 1]} : vector<8x64xf32> to vector<8x32xf32>
    %60 = vector.extract_strided_slice %58 {offsets = [0, 32], sizes = [8, 32], strides = [1, 1]} : vector<8x64xf32> to vector<8x32xf32>
    %61 = vector.extract_strided_slice %49 {offsets = [0, 64], sizes = [8, 32], strides = [1, 1]} : vector<8x96xf32> to vector<8x32xf32>
    %62 = arith.addf %61, %11 : vector<8x32xf32>
    %63 = vector.extract_strided_slice %27 {offsets = [0, 64], sizes = [8, 32], strides = [1, 1]} : vector<8x96xf32> to vector<8x32xf32>
    %64 = arith.addf %63, %14 : vector<8x32xf32>
    %65 = arith.mulf %59, %64 : vector<8x32xf32>
    %66 = arith.addf %62, %65 : vector<8x32xf32>
    %67 = math.tanh %66 : vector<8x32xf32>
    %cst_22 = arith.constant 1.000000e+00 : f32
    %68 = vector.broadcast %cst_22 : f32 to vector<8x32xf32>
    %69 = arith.subf %68, %60 : vector<8x32xf32>
    %70 = arith.mulf %69, %67 : vector<8x32xf32>
    %71 = arith.mulf %60, %22 : vector<8x32xf32>
    %72 = arith.addf %70, %71 : vector<8x32xf32>
    %73 = vector.extract_strided_slice %20 {offsets = [8, 0], sizes = [8, 96], strides = [1, 1]} : vector<64x96xf32> to vector<8x96xf32>
    %74 = tpu.concatenate %48, %72 in 1 : vector<8x32xf32>, vector<8x32xf32> -> vector<8x64xf32>
    %cst_23 = arith.constant dense<0.000000e+00> : vector<8x192xf32>
    %75 = tpu.matmul %74, %0, %cst_23 {dimension_numbers = #tpu.dot_dimension_numbers<[1], [0], [0], [1], [0, 0, 1, 1], [], []>} : vector<8x64xf32>, vector<64x192xf32>, vector<8x192xf32> -> vector<8x192xf32>
    %76 = vector.extract_strided_slice %75 {offsets = [0, 0], sizes = [8, 96], strides = [1, 1]} : vector<8x192xf32> to vector<8x96xf32>
    %77 = vector.extract_strided_slice %75 {offsets = [0, 96], sizes = [8, 96], strides = [1, 1]} : vector<8x192xf32> to vector<8x96xf32>
    %78 = vector.extract_strided_slice %73 {offsets = [0, 0], sizes = [8, 64], strides = [1, 1]} : vector<8x96xf32> to vector<8x64xf32>
    %79 = vector.extract_strided_slice %76 {offsets = [0, 0], sizes = [8, 64], strides = [1, 1]} : vector<8x96xf32> to vector<8x64xf32>
    %80 = arith.addf %78, %79 : vector<8x64xf32>
    %81 = arith.negf %80 : vector<8x64xf32>
    %82 = math.exp %81 : vector<8x64xf32>
    %cst_24 = arith.constant 1.000000e+00 : f32
    %83 = vector.broadcast %cst_24 : f32 to vector<8x64xf32>
    %84 = arith.addf %83, %82 : vector<8x64xf32>
    %85 = arith.divf %83, %84 : vector<8x64xf32>
    %86 = vector.extract_strided_slice %85 {offsets = [0, 0], sizes = [8, 32], strides = [1, 1]} : vector<8x64xf32> to vector<8x32xf32>
    %87 = vector.extract_strided_slice %85 {offsets = [0, 32], sizes = [8, 32], strides = [1, 1]} : vector<8x64xf32> to vector<8x32xf32>
    %88 = vector.extract_strided_slice %73 {offsets = [0, 64], sizes = [8, 32], strides = [1, 1]} : vector<8x96xf32> to vector<8x32xf32>
    %89 = vector.extract_strided_slice %76 {offsets = [0, 64], sizes = [8, 32], strides = [1, 1]} : vector<8x96xf32> to vector<8x32xf32>
    %90 = arith.addf %89, %5 : vector<8x32xf32>
    %91 = arith.mulf %86, %90 : vector<8x32xf32>
    %92 = arith.addf %88, %91 : vector<8x32xf32>
    %93 = math.tanh %92 : vector<8x32xf32>
    %cst_25 = arith.constant 1.000000e+00 : f32
    %94 = vector.broadcast %cst_25 : f32 to vector<8x32xf32>
    %95 = arith.subf %94, %87 : vector<8x32xf32>
    %96 = arith.mulf %95, %93 : vector<8x32xf32>
    %97 = arith.mulf %87, %48 : vector<8x32xf32>
    %98 = arith.addf %96, %97 : vector<8x32xf32>
    %cst_26 = arith.constant dense<0.000000e+00> : vector<8x96xf32>
    %99 = tpu.matmul %98, %1, %cst_26 {dimension_numbers = #tpu.dot_dimension_numbers<[1], [0], [0], [1], [0, 0, 1, 1], [], []>} : vector<8x32xf32>, vector<32x96xf32>, vector<8x96xf32> -> vector<8x96xf32>
    %100 = vector.extract_strided_slice %99 {offsets = [0, 0], sizes = [8, 64], strides = [1, 1]} : vector<8x96xf32> to vector<8x64xf32>
    %101 = vector.extract_strided_slice %77 {offsets = [0, 0], sizes = [8, 64], strides = [1, 1]} : vector<8x96xf32> to vector<8x64xf32>
    %102 = arith.addf %100, %101 : vector<8x64xf32>
    %103 = arith.addf %102, %8 : vector<8x64xf32>
    %104 = arith.negf %103 : vector<8x64xf32>
    %105 = math.exp %104 : vector<8x64xf32>
    %cst_27 = arith.constant 1.000000e+00 : f32
    %106 = vector.broadcast %cst_27 : f32 to vector<8x64xf32>
    %107 = arith.addf %106, %105 : vector<8x64xf32>
    %108 = arith.divf %106, %107 : vector<8x64xf32>
    %109 = vector.extract_strided_slice %108 {offsets = [0, 0], sizes = [8, 32], strides = [1, 1]} : vector<8x64xf32> to vector<8x32xf32>
    %110 = vector.extract_strided_slice %108 {offsets = [0, 32], sizes = [8, 32], strides = [1, 1]} : vector<8x64xf32> to vector<8x32xf32>
    %111 = vector.extract_strided_slice %99 {offsets = [0, 64], sizes = [8, 32], strides = [1, 1]} : vector<8x96xf32> to vector<8x32xf32>
    %112 = arith.addf %111, %11 : vector<8x32xf32>
    %113 = vector.extract_strided_slice %77 {offsets = [0, 64], sizes = [8, 32], strides = [1, 1]} : vector<8x96xf32> to vector<8x32xf32>
    %114 = arith.addf %113, %14 : vector<8x32xf32>
    %115 = arith.mulf %109, %114 : vector<8x32xf32>
    %116 = arith.addf %112, %115 : vector<8x32xf32>
    %117 = math.tanh %116 : vector<8x32xf32>
    %cst_28 = arith.constant 1.000000e+00 : f32
    %118 = vector.broadcast %cst_28 : f32 to vector<8x32xf32>
    %119 = arith.subf %118, %110 : vector<8x32xf32>
    %120 = arith.mulf %119, %117 : vector<8x32xf32>
    %121 = arith.mulf %110, %72 : vector<8x32xf32>
    %122 = arith.addf %120, %121 : vector<8x32xf32>
    %123 = vector.extract_strided_slice %20 {offsets = [16, 0], sizes = [8, 96], strides = [1, 1]} : vector<64x96xf32> to vector<8x96xf32>
    %124 = tpu.concatenate %98, %122 in 1 : vector<8x32xf32>, vector<8x32xf32> -> vector<8x64xf32>
    %cst_29 = arith.constant dense<0.000000e+00> : vector<8x192xf32>
    %125 = tpu.matmul %124, %0, %cst_29 {dimension_numbers = #tpu.dot_dimension_numbers<[1], [0], [0], [1], [0, 0, 1, 1], [], []>} : vector<8x64xf32>, vector<64x192xf32>, vector<8x192xf32> -> vector<8x192xf32>
    %126 = vector.extract_strided_slice %125 {offsets = [0, 0], sizes = [8, 96], strides = [1, 1]} : vector<8x192xf32> to vector<8x96xf32>
    %127 = vector.extract_strided_slice %125 {offsets = [0, 96], sizes = [8, 96], strides = [1, 1]} : vector<8x192xf32> to vector<8x96xf32>
    %128 = vector.extract_strided_slice %123 {offsets = [0, 0], sizes = [8, 64], strides = [1, 1]} : vector<8x96xf32> to vector<8x64xf32>
    %129 = vector.extract_strided_slice %126 {offsets = [0, 0], sizes = [8, 64], strides = [1, 1]} : vector<8x96xf32> to vector<8x64xf32>
    %130 = arith.addf %128, %129 : vector<8x64xf32>
    %131 = arith.negf %130 : vector<8x64xf32>
    %132 = math.exp %131 : vector<8x64xf32>
    %cst_30 = arith.constant 1.000000e+00 : f32
    %133 = vector.broadcast %cst_30 : f32 to vector<8x64xf32>
    %134 = arith.addf %133, %132 : vector<8x64xf32>
    %135 = arith.divf %133, %134 : vector<8x64xf32>
    %136 = vector.extract_strided_slice %135 {offsets = [0, 0], sizes = [8, 32], strides = [1, 1]} : vector<8x64xf32> to vector<8x32xf32>
    %137 = vector.extract_strided_slice %135 {offsets = [0, 32], sizes = [8, 32], strides = [1, 1]} : vector<8x64xf32> to vector<8x32xf32>
    %138 = vector.extract_strided_slice %123 {offsets = [0, 64], sizes = [8, 32], strides = [1, 1]} : vector<8x96xf32> to vector<8x32xf32>
    %139 = vector.extract_strided_slice %126 {offsets = [0, 64], sizes = [8, 32], strides = [1, 1]} : vector<8x96xf32> to vector<8x32xf32>
    %140 = arith.addf %139, %5 : vector<8x32xf32>
    %141 = arith.mulf %136, %140 : vector<8x32xf32>
    %142 = arith.addf %138, %141 : vector<8x32xf32>
    %143 = math.tanh %142 : vector<8x32xf32>
    %cst_31 = arith.constant 1.000000e+00 : f32
    %144 = vector.broadcast %cst_31 : f32 to vector<8x32xf32>
    %145 = arith.subf %144, %137 : vector<8x32xf32>
    %146 = arith.mulf %145, %143 : vector<8x32xf32>
    %147 = arith.mulf %137, %98 : vector<8x32xf32>
    %148 = arith.addf %146, %147 : vector<8x32xf32>
    %cst_32 = arith.constant dense<0.000000e+00> : vector<8x96xf32>
    %149 = tpu.matmul %148, %1, %cst_32 {dimension_numbers = #tpu.dot_dimension_numbers<[1], [0], [0], [1], [0, 0, 1, 1], [], []>} : vector<8x32xf32>, vector<32x96xf32>, vector<8x96xf32> -> vector<8x96xf32>
    %150 = vector.extract_strided_slice %149 {offsets = [0, 0], sizes = [8, 64], strides = [1, 1]} : vector<8x96xf32> to vector<8x64xf32>
    %151 = vector.extract_strided_slice %127 {offsets = [0, 0], sizes = [8, 64], strides = [1, 1]} : vector<8x96xf32> to vector<8x64xf32>
    %152 = arith.addf %150, %151 : vector<8x64xf32>
    %153 = arith.addf %152, %8 : vector<8x64xf32>
    %154 = arith.negf %153 : vector<8x64xf32>
    %155 = math.exp %154 : vector<8x64xf32>
    %cst_33 = arith.constant 1.000000e+00 : f32
    %156 = vector.broadcast %cst_33 : f32 to vector<8x64xf32>
    %157 = arith.addf %156, %155 : vector<8x64xf32>
    %158 = arith.divf %156, %157 : vector<8x64xf32>
    %159 = vector.extract_strided_slice %158 {offsets = [0, 0], sizes = [8, 32], strides = [1, 1]} : vector<8x64xf32> to vector<8x32xf32>
    %160 = vector.extract_strided_slice %158 {offsets = [0, 32], sizes = [8, 32], strides = [1, 1]} : vector<8x64xf32> to vector<8x32xf32>
    %161 = vector.extract_strided_slice %149 {offsets = [0, 64], sizes = [8, 32], strides = [1, 1]} : vector<8x96xf32> to vector<8x32xf32>
    %162 = arith.addf %161, %11 : vector<8x32xf32>
    %163 = vector.extract_strided_slice %127 {offsets = [0, 64], sizes = [8, 32], strides = [1, 1]} : vector<8x96xf32> to vector<8x32xf32>
    %164 = arith.addf %163, %14 : vector<8x32xf32>
    %165 = arith.mulf %159, %164 : vector<8x32xf32>
    %166 = arith.addf %162, %165 : vector<8x32xf32>
    %167 = math.tanh %166 : vector<8x32xf32>
    %cst_34 = arith.constant 1.000000e+00 : f32
    %168 = vector.broadcast %cst_34 : f32 to vector<8x32xf32>
    %169 = arith.subf %168, %160 : vector<8x32xf32>
    %170 = arith.mulf %169, %167 : vector<8x32xf32>
    %171 = arith.mulf %160, %122 : vector<8x32xf32>
    %172 = arith.addf %170, %171 : vector<8x32xf32>
    %173 = vector.extract_strided_slice %20 {offsets = [24, 0], sizes = [8, 96], strides = [1, 1]} : vector<64x96xf32> to vector<8x96xf32>
    %174 = tpu.concatenate %148, %172 in 1 : vector<8x32xf32>, vector<8x32xf32> -> vector<8x64xf32>
    %cst_35 = arith.constant dense<0.000000e+00> : vector<8x192xf32>
    %175 = tpu.matmul %174, %0, %cst_35 {dimension_numbers = #tpu.dot_dimension_numbers<[1], [0], [0], [1], [0, 0, 1, 1], [], []>} : vector<8x64xf32>, vector<64x192xf32>, vector<8x192xf32> -> vector<8x192xf32>
    %176 = vector.extract_strided_slice %175 {offsets = [0, 0], sizes = [8, 96], strides = [1, 1]} : vector<8x192xf32> to vector<8x96xf32>
    %177 = vector.extract_strided_slice %175 {offsets = [0, 96], sizes = [8, 96], strides = [1, 1]} : vector<8x192xf32> to vector<8x96xf32>
    %178 = vector.extract_strided_slice %173 {offsets = [0, 0], sizes = [8, 64], strides = [1, 1]} : vector<8x96xf32> to vector<8x64xf32>
    %179 = vector.extract_strided_slice %176 {offsets = [0, 0], sizes = [8, 64], strides = [1, 1]} : vector<8x96xf32> to vector<8x64xf32>
    %180 = arith.addf %178, %179 : vector<8x64xf32>
    %181 = arith.negf %180 : vector<8x64xf32>
    %182 = math.exp %181 : vector<8x64xf32>
    %cst_36 = arith.constant 1.000000e+00 : f32
    %183 = vector.broadcast %cst_36 : f32 to vector<8x64xf32>
    %184 = arith.addf %183, %182 : vector<8x64xf32>
    %185 = arith.divf %183, %184 : vector<8x64xf32>
    %186 = vector.extract_strided_slice %185 {offsets = [0, 0], sizes = [8, 32], strides = [1, 1]} : vector<8x64xf32> to vector<8x32xf32>
    %187 = vector.extract_strided_slice %185 {offsets = [0, 32], sizes = [8, 32], strides = [1, 1]} : vector<8x64xf32> to vector<8x32xf32>
    %188 = vector.extract_strided_slice %173 {offsets = [0, 64], sizes = [8, 32], strides = [1, 1]} : vector<8x96xf32> to vector<8x32xf32>
    %189 = vector.extract_strided_slice %176 {offsets = [0, 64], sizes = [8, 32], strides = [1, 1]} : vector<8x96xf32> to vector<8x32xf32>
    %190 = arith.addf %189, %5 : vector<8x32xf32>
    %191 = arith.mulf %186, %190 : vector<8x32xf32>
    %192 = arith.addf %188, %191 : vector<8x32xf32>
    %193 = math.tanh %192 : vector<8x32xf32>
    %cst_37 = arith.constant 1.000000e+00 : f32
    %194 = vector.broadcast %cst_37 : f32 to vector<8x32xf32>
    %195 = arith.subf %194, %187 : vector<8x32xf32>
    %196 = arith.mulf %195, %193 : vector<8x32xf32>
    %197 = arith.mulf %187, %148 : vector<8x32xf32>
    %198 = arith.addf %196, %197 : vector<8x32xf32>
    %cst_38 = arith.constant dense<0.000000e+00> : vector<8x96xf32>
    %199 = tpu.matmul %198, %1, %cst_38 {dimension_numbers = #tpu.dot_dimension_numbers<[1], [0], [0], [1], [0, 0, 1, 1], [], []>} : vector<8x32xf32>, vector<32x96xf32>, vector<8x96xf32> -> vector<8x96xf32>
    %200 = vector.extract_strided_slice %199 {offsets = [0, 0], sizes = [8, 64], strides = [1, 1]} : vector<8x96xf32> to vector<8x64xf32>
    %201 = vector.extract_strided_slice %177 {offsets = [0, 0], sizes = [8, 64], strides = [1, 1]} : vector<8x96xf32> to vector<8x64xf32>
    %202 = arith.addf %200, %201 : vector<8x64xf32>
    %203 = arith.addf %202, %8 : vector<8x64xf32>
    %204 = arith.negf %203 : vector<8x64xf32>
    %205 = math.exp %204 : vector<8x64xf32>
    %cst_39 = arith.constant 1.000000e+00 : f32
    %206 = vector.broadcast %cst_39 : f32 to vector<8x64xf32>
    %207 = arith.addf %206, %205 : vector<8x64xf32>
    %208 = arith.divf %206, %207 : vector<8x64xf32>
    %209 = vector.extract_strided_slice %208 {offsets = [0, 0], sizes = [8, 32], strides = [1, 1]} : vector<8x64xf32> to vector<8x32xf32>
    %210 = vector.extract_strided_slice %208 {offsets = [0, 32], sizes = [8, 32], strides = [1, 1]} : vector<8x64xf32> to vector<8x32xf32>
    %211 = vector.extract_strided_slice %199 {offsets = [0, 64], sizes = [8, 32], strides = [1, 1]} : vector<8x96xf32> to vector<8x32xf32>
    %212 = arith.addf %211, %11 : vector<8x32xf32>
    %213 = vector.extract_strided_slice %177 {offsets = [0, 64], sizes = [8, 32], strides = [1, 1]} : vector<8x96xf32> to vector<8x32xf32>
    %214 = arith.addf %213, %14 : vector<8x32xf32>
    %215 = arith.mulf %209, %214 : vector<8x32xf32>
    %216 = arith.addf %212, %215 : vector<8x32xf32>
    %217 = math.tanh %216 : vector<8x32xf32>
    %cst_40 = arith.constant 1.000000e+00 : f32
    %218 = vector.broadcast %cst_40 : f32 to vector<8x32xf32>
    %219 = arith.subf %218, %210 : vector<8x32xf32>
    %220 = arith.mulf %219, %217 : vector<8x32xf32>
    %221 = arith.mulf %210, %172 : vector<8x32xf32>
    %222 = arith.addf %220, %221 : vector<8x32xf32>
    %223 = vector.extract_strided_slice %20 {offsets = [32, 0], sizes = [8, 96], strides = [1, 1]} : vector<64x96xf32> to vector<8x96xf32>
    %224 = tpu.concatenate %198, %222 in 1 : vector<8x32xf32>, vector<8x32xf32> -> vector<8x64xf32>
    %cst_41 = arith.constant dense<0.000000e+00> : vector<8x192xf32>
    %225 = tpu.matmul %224, %0, %cst_41 {dimension_numbers = #tpu.dot_dimension_numbers<[1], [0], [0], [1], [0, 0, 1, 1], [], []>} : vector<8x64xf32>, vector<64x192xf32>, vector<8x192xf32> -> vector<8x192xf32>
    %226 = vector.extract_strided_slice %225 {offsets = [0, 0], sizes = [8, 96], strides = [1, 1]} : vector<8x192xf32> to vector<8x96xf32>
    %227 = vector.extract_strided_slice %225 {offsets = [0, 96], sizes = [8, 96], strides = [1, 1]} : vector<8x192xf32> to vector<8x96xf32>
    %228 = vector.extract_strided_slice %223 {offsets = [0, 0], sizes = [8, 64], strides = [1, 1]} : vector<8x96xf32> to vector<8x64xf32>
    %229 = vector.extract_strided_slice %226 {offsets = [0, 0], sizes = [8, 64], strides = [1, 1]} : vector<8x96xf32> to vector<8x64xf32>
    %230 = arith.addf %228, %229 : vector<8x64xf32>
    %231 = arith.negf %230 : vector<8x64xf32>
    %232 = math.exp %231 : vector<8x64xf32>
    %cst_42 = arith.constant 1.000000e+00 : f32
    %233 = vector.broadcast %cst_42 : f32 to vector<8x64xf32>
    %234 = arith.addf %233, %232 : vector<8x64xf32>
    %235 = arith.divf %233, %234 : vector<8x64xf32>
    %236 = vector.extract_strided_slice %235 {offsets = [0, 0], sizes = [8, 32], strides = [1, 1]} : vector<8x64xf32> to vector<8x32xf32>
    %237 = vector.extract_strided_slice %235 {offsets = [0, 32], sizes = [8, 32], strides = [1, 1]} : vector<8x64xf32> to vector<8x32xf32>
    %238 = vector.extract_strided_slice %223 {offsets = [0, 64], sizes = [8, 32], strides = [1, 1]} : vector<8x96xf32> to vector<8x32xf32>
    %239 = vector.extract_strided_slice %226 {offsets = [0, 64], sizes = [8, 32], strides = [1, 1]} : vector<8x96xf32> to vector<8x32xf32>
    %240 = arith.addf %239, %5 : vector<8x32xf32>
    %241 = arith.mulf %236, %240 : vector<8x32xf32>
    %242 = arith.addf %238, %241 : vector<8x32xf32>
    %243 = math.tanh %242 : vector<8x32xf32>
    %cst_43 = arith.constant 1.000000e+00 : f32
    %244 = vector.broadcast %cst_43 : f32 to vector<8x32xf32>
    %245 = arith.subf %244, %237 : vector<8x32xf32>
    %246 = arith.mulf %245, %243 : vector<8x32xf32>
    %247 = arith.mulf %237, %198 : vector<8x32xf32>
    %248 = arith.addf %246, %247 : vector<8x32xf32>
    %cst_44 = arith.constant dense<0.000000e+00> : vector<8x96xf32>
    %249 = tpu.matmul %248, %1, %cst_44 {dimension_numbers = #tpu.dot_dimension_numbers<[1], [0], [0], [1], [0, 0, 1, 1], [], []>} : vector<8x32xf32>, vector<32x96xf32>, vector<8x96xf32> -> vector<8x96xf32>
    %250 = vector.extract_strided_slice %249 {offsets = [0, 0], sizes = [8, 64], strides = [1, 1]} : vector<8x96xf32> to vector<8x64xf32>
    %251 = vector.extract_strided_slice %227 {offsets = [0, 0], sizes = [8, 64], strides = [1, 1]} : vector<8x96xf32> to vector<8x64xf32>
    %252 = arith.addf %250, %251 : vector<8x64xf32>
    %253 = arith.addf %252, %8 : vector<8x64xf32>
    %254 = arith.negf %253 : vector<8x64xf32>
    %255 = math.exp %254 : vector<8x64xf32>
    %cst_45 = arith.constant 1.000000e+00 : f32
    %256 = vector.broadcast %cst_45 : f32 to vector<8x64xf32>
    %257 = arith.addf %256, %255 : vector<8x64xf32>
    %258 = arith.divf %256, %257 : vector<8x64xf32>
    %259 = vector.extract_strided_slice %258 {offsets = [0, 0], sizes = [8, 32], strides = [1, 1]} : vector<8x64xf32> to vector<8x32xf32>
    %260 = vector.extract_strided_slice %258 {offsets = [0, 32], sizes = [8, 32], strides = [1, 1]} : vector<8x64xf32> to vector<8x32xf32>
    %261 = vector.extract_strided_slice %249 {offsets = [0, 64], sizes = [8, 32], strides = [1, 1]} : vector<8x96xf32> to vector<8x32xf32>
    %262 = arith.addf %261, %11 : vector<8x32xf32>
    %263 = vector.extract_strided_slice %227 {offsets = [0, 64], sizes = [8, 32], strides = [1, 1]} : vector<8x96xf32> to vector<8x32xf32>
    %264 = arith.addf %263, %14 : vector<8x32xf32>
    %265 = arith.mulf %259, %264 : vector<8x32xf32>
    %266 = arith.addf %262, %265 : vector<8x32xf32>
    %267 = math.tanh %266 : vector<8x32xf32>
    %cst_46 = arith.constant 1.000000e+00 : f32
    %268 = vector.broadcast %cst_46 : f32 to vector<8x32xf32>
    %269 = arith.subf %268, %260 : vector<8x32xf32>
    %270 = arith.mulf %269, %267 : vector<8x32xf32>
    %271 = arith.mulf %260, %222 : vector<8x32xf32>
    %272 = arith.addf %270, %271 : vector<8x32xf32>
    %273 = vector.extract_strided_slice %20 {offsets = [40, 0], sizes = [8, 96], strides = [1, 1]} : vector<64x96xf32> to vector<8x96xf32>
    %274 = tpu.concatenate %248, %272 in 1 : vector<8x32xf32>, vector<8x32xf32> -> vector<8x64xf32>
    %cst_47 = arith.constant dense<0.000000e+00> : vector<8x192xf32>
    %275 = tpu.matmul %274, %0, %cst_47 {dimension_numbers = #tpu.dot_dimension_numbers<[1], [0], [0], [1], [0, 0, 1, 1], [], []>} : vector<8x64xf32>, vector<64x192xf32>, vector<8x192xf32> -> vector<8x192xf32>
    %276 = vector.extract_strided_slice %275 {offsets = [0, 0], sizes = [8, 96], strides = [1, 1]} : vector<8x192xf32> to vector<8x96xf32>
    %277 = vector.extract_strided_slice %275 {offsets = [0, 96], sizes = [8, 96], strides = [1, 1]} : vector<8x192xf32> to vector<8x96xf32>
    %278 = vector.extract_strided_slice %273 {offsets = [0, 0], sizes = [8, 64], strides = [1, 1]} : vector<8x96xf32> to vector<8x64xf32>
    %279 = vector.extract_strided_slice %276 {offsets = [0, 0], sizes = [8, 64], strides = [1, 1]} : vector<8x96xf32> to vector<8x64xf32>
    %280 = arith.addf %278, %279 : vector<8x64xf32>
    %281 = arith.negf %280 : vector<8x64xf32>
    %282 = math.exp %281 : vector<8x64xf32>
    %cst_48 = arith.constant 1.000000e+00 : f32
    %283 = vector.broadcast %cst_48 : f32 to vector<8x64xf32>
    %284 = arith.addf %283, %282 : vector<8x64xf32>
    %285 = arith.divf %283, %284 : vector<8x64xf32>
    %286 = vector.extract_strided_slice %285 {offsets = [0, 0], sizes = [8, 32], strides = [1, 1]} : vector<8x64xf32> to vector<8x32xf32>
    %287 = vector.extract_strided_slice %285 {offsets = [0, 32], sizes = [8, 32], strides = [1, 1]} : vector<8x64xf32> to vector<8x32xf32>
    %288 = vector.extract_strided_slice %273 {offsets = [0, 64], sizes = [8, 32], strides = [1, 1]} : vector<8x96xf32> to vector<8x32xf32>
    %289 = vector.extract_strided_slice %276 {offsets = [0, 64], sizes = [8, 32], strides = [1, 1]} : vector<8x96xf32> to vector<8x32xf32>
    %290 = arith.addf %289, %5 : vector<8x32xf32>
    %291 = arith.mulf %286, %290 : vector<8x32xf32>
    %292 = arith.addf %288, %291 : vector<8x32xf32>
    %293 = math.tanh %292 : vector<8x32xf32>
    %cst_49 = arith.constant 1.000000e+00 : f32
    %294 = vector.broadcast %cst_49 : f32 to vector<8x32xf32>
    %295 = arith.subf %294, %287 : vector<8x32xf32>
    %296 = arith.mulf %295, %293 : vector<8x32xf32>
    %297 = arith.mulf %287, %248 : vector<8x32xf32>
    %298 = arith.addf %296, %297 : vector<8x32xf32>
    %cst_50 = arith.constant dense<0.000000e+00> : vector<8x96xf32>
    %299 = tpu.matmul %298, %1, %cst_50 {dimension_numbers = #tpu.dot_dimension_numbers<[1], [0], [0], [1], [0, 0, 1, 1], [], []>} : vector<8x32xf32>, vector<32x96xf32>, vector<8x96xf32> -> vector<8x96xf32>
    %300 = vector.extract_strided_slice %299 {offsets = [0, 0], sizes = [8, 64], strides = [1, 1]} : vector<8x96xf32> to vector<8x64xf32>
    %301 = vector.extract_strided_slice %277 {offsets = [0, 0], sizes = [8, 64], strides = [1, 1]} : vector<8x96xf32> to vector<8x64xf32>
    %302 = arith.addf %300, %301 : vector<8x64xf32>
    %303 = arith.addf %302, %8 : vector<8x64xf32>
    %304 = arith.negf %303 : vector<8x64xf32>
    %305 = math.exp %304 : vector<8x64xf32>
    %cst_51 = arith.constant 1.000000e+00 : f32
    %306 = vector.broadcast %cst_51 : f32 to vector<8x64xf32>
    %307 = arith.addf %306, %305 : vector<8x64xf32>
    %308 = arith.divf %306, %307 : vector<8x64xf32>
    %309 = vector.extract_strided_slice %308 {offsets = [0, 0], sizes = [8, 32], strides = [1, 1]} : vector<8x64xf32> to vector<8x32xf32>
    %310 = vector.extract_strided_slice %308 {offsets = [0, 32], sizes = [8, 32], strides = [1, 1]} : vector<8x64xf32> to vector<8x32xf32>
    %311 = vector.extract_strided_slice %299 {offsets = [0, 64], sizes = [8, 32], strides = [1, 1]} : vector<8x96xf32> to vector<8x32xf32>
    %312 = arith.addf %311, %11 : vector<8x32xf32>
    %313 = vector.extract_strided_slice %277 {offsets = [0, 64], sizes = [8, 32], strides = [1, 1]} : vector<8x96xf32> to vector<8x32xf32>
    %314 = arith.addf %313, %14 : vector<8x32xf32>
    %315 = arith.mulf %309, %314 : vector<8x32xf32>
    %316 = arith.addf %312, %315 : vector<8x32xf32>
    %317 = math.tanh %316 : vector<8x32xf32>
    %cst_52 = arith.constant 1.000000e+00 : f32
    %318 = vector.broadcast %cst_52 : f32 to vector<8x32xf32>
    %319 = arith.subf %318, %310 : vector<8x32xf32>
    %320 = arith.mulf %319, %317 : vector<8x32xf32>
    %321 = arith.mulf %310, %272 : vector<8x32xf32>
    %322 = arith.addf %320, %321 : vector<8x32xf32>
    %323 = vector.extract_strided_slice %20 {offsets = [48, 0], sizes = [8, 96], strides = [1, 1]} : vector<64x96xf32> to vector<8x96xf32>
    %324 = tpu.concatenate %298, %322 in 1 : vector<8x32xf32>, vector<8x32xf32> -> vector<8x64xf32>
    %cst_53 = arith.constant dense<0.000000e+00> : vector<8x192xf32>
    %325 = tpu.matmul %324, %0, %cst_53 {dimension_numbers = #tpu.dot_dimension_numbers<[1], [0], [0], [1], [0, 0, 1, 1], [], []>} : vector<8x64xf32>, vector<64x192xf32>, vector<8x192xf32> -> vector<8x192xf32>
    %326 = vector.extract_strided_slice %325 {offsets = [0, 0], sizes = [8, 96], strides = [1, 1]} : vector<8x192xf32> to vector<8x96xf32>
    %327 = vector.extract_strided_slice %325 {offsets = [0, 96], sizes = [8, 96], strides = [1, 1]} : vector<8x192xf32> to vector<8x96xf32>
    %328 = vector.extract_strided_slice %323 {offsets = [0, 0], sizes = [8, 64], strides = [1, 1]} : vector<8x96xf32> to vector<8x64xf32>
    %329 = vector.extract_strided_slice %326 {offsets = [0, 0], sizes = [8, 64], strides = [1, 1]} : vector<8x96xf32> to vector<8x64xf32>
    %330 = arith.addf %328, %329 : vector<8x64xf32>
    %331 = arith.negf %330 : vector<8x64xf32>
    %332 = math.exp %331 : vector<8x64xf32>
    %cst_54 = arith.constant 1.000000e+00 : f32
    %333 = vector.broadcast %cst_54 : f32 to vector<8x64xf32>
    %334 = arith.addf %333, %332 : vector<8x64xf32>
    %335 = arith.divf %333, %334 : vector<8x64xf32>
    %336 = vector.extract_strided_slice %335 {offsets = [0, 0], sizes = [8, 32], strides = [1, 1]} : vector<8x64xf32> to vector<8x32xf32>
    %337 = vector.extract_strided_slice %335 {offsets = [0, 32], sizes = [8, 32], strides = [1, 1]} : vector<8x64xf32> to vector<8x32xf32>
    %338 = vector.extract_strided_slice %323 {offsets = [0, 64], sizes = [8, 32], strides = [1, 1]} : vector<8x96xf32> to vector<8x32xf32>
    %339 = vector.extract_strided_slice %326 {offsets = [0, 64], sizes = [8, 32], strides = [1, 1]} : vector<8x96xf32> to vector<8x32xf32>
    %340 = arith.addf %339, %5 : vector<8x32xf32>
    %341 = arith.mulf %336, %340 : vector<8x32xf32>
    %342 = arith.addf %338, %341 : vector<8x32xf32>
    %343 = math.tanh %342 : vector<8x32xf32>
    %cst_55 = arith.constant 1.000000e+00 : f32
    %344 = vector.broadcast %cst_55 : f32 to vector<8x32xf32>
    %345 = arith.subf %344, %337 : vector<8x32xf32>
    %346 = arith.mulf %345, %343 : vector<8x32xf32>
    %347 = arith.mulf %337, %298 : vector<8x32xf32>
    %348 = arith.addf %346, %347 : vector<8x32xf32>
    %cst_56 = arith.constant dense<0.000000e+00> : vector<8x96xf32>
    %349 = tpu.matmul %348, %1, %cst_56 {dimension_numbers = #tpu.dot_dimension_numbers<[1], [0], [0], [1], [0, 0, 1, 1], [], []>} : vector<8x32xf32>, vector<32x96xf32>, vector<8x96xf32> -> vector<8x96xf32>
    %350 = vector.extract_strided_slice %349 {offsets = [0, 0], sizes = [8, 64], strides = [1, 1]} : vector<8x96xf32> to vector<8x64xf32>
    %351 = vector.extract_strided_slice %327 {offsets = [0, 0], sizes = [8, 64], strides = [1, 1]} : vector<8x96xf32> to vector<8x64xf32>
    %352 = arith.addf %350, %351 : vector<8x64xf32>
    %353 = arith.addf %352, %8 : vector<8x64xf32>
    %354 = arith.negf %353 : vector<8x64xf32>
    %355 = math.exp %354 : vector<8x64xf32>
    %cst_57 = arith.constant 1.000000e+00 : f32
    %356 = vector.broadcast %cst_57 : f32 to vector<8x64xf32>
    %357 = arith.addf %356, %355 : vector<8x64xf32>
    %358 = arith.divf %356, %357 : vector<8x64xf32>
    %359 = vector.extract_strided_slice %358 {offsets = [0, 0], sizes = [8, 32], strides = [1, 1]} : vector<8x64xf32> to vector<8x32xf32>
    %360 = vector.extract_strided_slice %358 {offsets = [0, 32], sizes = [8, 32], strides = [1, 1]} : vector<8x64xf32> to vector<8x32xf32>
    %361 = vector.extract_strided_slice %349 {offsets = [0, 64], sizes = [8, 32], strides = [1, 1]} : vector<8x96xf32> to vector<8x32xf32>
    %362 = arith.addf %361, %11 : vector<8x32xf32>
    %363 = vector.extract_strided_slice %327 {offsets = [0, 64], sizes = [8, 32], strides = [1, 1]} : vector<8x96xf32> to vector<8x32xf32>
    %364 = arith.addf %363, %14 : vector<8x32xf32>
    %365 = arith.mulf %359, %364 : vector<8x32xf32>
    %366 = arith.addf %362, %365 : vector<8x32xf32>
    %367 = math.tanh %366 : vector<8x32xf32>
    %cst_58 = arith.constant 1.000000e+00 : f32
    %368 = vector.broadcast %cst_58 : f32 to vector<8x32xf32>
    %369 = arith.subf %368, %360 : vector<8x32xf32>
    %370 = arith.mulf %369, %367 : vector<8x32xf32>
    %371 = arith.mulf %360, %322 : vector<8x32xf32>
    %372 = arith.addf %370, %371 : vector<8x32xf32>
    %373 = vector.extract_strided_slice %20 {offsets = [56, 0], sizes = [8, 96], strides = [1, 1]} : vector<64x96xf32> to vector<8x96xf32>
    %374 = tpu.concatenate %348, %372 in 1 : vector<8x32xf32>, vector<8x32xf32> -> vector<8x64xf32>
    %cst_59 = arith.constant dense<0.000000e+00> : vector<8x192xf32>
    %375 = tpu.matmul %374, %0, %cst_59 {dimension_numbers = #tpu.dot_dimension_numbers<[1], [0], [0], [1], [0, 0, 1, 1], [], []>} : vector<8x64xf32>, vector<64x192xf32>, vector<8x192xf32> -> vector<8x192xf32>
    %376 = vector.extract_strided_slice %375 {offsets = [0, 0], sizes = [8, 96], strides = [1, 1]} : vector<8x192xf32> to vector<8x96xf32>
    %377 = vector.extract_strided_slice %375 {offsets = [0, 96], sizes = [8, 96], strides = [1, 1]} : vector<8x192xf32> to vector<8x96xf32>
    %378 = vector.extract_strided_slice %373 {offsets = [0, 0], sizes = [8, 64], strides = [1, 1]} : vector<8x96xf32> to vector<8x64xf32>
    %379 = vector.extract_strided_slice %376 {offsets = [0, 0], sizes = [8, 64], strides = [1, 1]} : vector<8x96xf32> to vector<8x64xf32>
    %380 = arith.addf %378, %379 : vector<8x64xf32>
    %381 = arith.negf %380 : vector<8x64xf32>
    %382 = math.exp %381 : vector<8x64xf32>
    %cst_60 = arith.constant 1.000000e+00 : f32
    %383 = vector.broadcast %cst_60 : f32 to vector<8x64xf32>
    %384 = arith.addf %383, %382 : vector<8x64xf32>
    %385 = arith.divf %383, %384 : vector<8x64xf32>
    %386 = vector.extract_strided_slice %385 {offsets = [0, 0], sizes = [8, 32], strides = [1, 1]} : vector<8x64xf32> to vector<8x32xf32>
    %387 = vector.extract_strided_slice %385 {offsets = [0, 32], sizes = [8, 32], strides = [1, 1]} : vector<8x64xf32> to vector<8x32xf32>
    %388 = vector.extract_strided_slice %373 {offsets = [0, 64], sizes = [8, 32], strides = [1, 1]} : vector<8x96xf32> to vector<8x32xf32>
    %389 = vector.extract_strided_slice %376 {offsets = [0, 64], sizes = [8, 32], strides = [1, 1]} : vector<8x96xf32> to vector<8x32xf32>
    %390 = arith.addf %389, %5 : vector<8x32xf32>
    %391 = arith.mulf %386, %390 : vector<8x32xf32>
    %392 = arith.addf %388, %391 : vector<8x32xf32>
    %393 = math.tanh %392 : vector<8x32xf32>
    %cst_61 = arith.constant 1.000000e+00 : f32
    %394 = vector.broadcast %cst_61 : f32 to vector<8x32xf32>
    %395 = arith.subf %394, %387 : vector<8x32xf32>
    %396 = arith.mulf %395, %393 : vector<8x32xf32>
    %397 = arith.mulf %387, %348 : vector<8x32xf32>
    %398 = arith.addf %396, %397 : vector<8x32xf32>
    %cst_62 = arith.constant dense<0.000000e+00> : vector<8x96xf32>
    %399 = tpu.matmul %398, %1, %cst_62 {dimension_numbers = #tpu.dot_dimension_numbers<[1], [0], [0], [1], [0, 0, 1, 1], [], []>} : vector<8x32xf32>, vector<32x96xf32>, vector<8x96xf32> -> vector<8x96xf32>
    %400 = vector.extract_strided_slice %399 {offsets = [0, 0], sizes = [8, 64], strides = [1, 1]} : vector<8x96xf32> to vector<8x64xf32>
    %401 = vector.extract_strided_slice %377 {offsets = [0, 0], sizes = [8, 64], strides = [1, 1]} : vector<8x96xf32> to vector<8x64xf32>
    %402 = arith.addf %400, %401 : vector<8x64xf32>
    %403 = arith.addf %402, %8 : vector<8x64xf32>
    %404 = arith.negf %403 : vector<8x64xf32>
    %405 = math.exp %404 : vector<8x64xf32>
    %cst_63 = arith.constant 1.000000e+00 : f32
    %406 = vector.broadcast %cst_63 : f32 to vector<8x64xf32>
    %407 = arith.addf %406, %405 : vector<8x64xf32>
    %408 = arith.divf %406, %407 : vector<8x64xf32>
    %409 = vector.extract_strided_slice %408 {offsets = [0, 0], sizes = [8, 32], strides = [1, 1]} : vector<8x64xf32> to vector<8x32xf32>
    %410 = vector.extract_strided_slice %408 {offsets = [0, 32], sizes = [8, 32], strides = [1, 1]} : vector<8x64xf32> to vector<8x32xf32>
    %411 = vector.extract_strided_slice %399 {offsets = [0, 64], sizes = [8, 32], strides = [1, 1]} : vector<8x96xf32> to vector<8x32xf32>
    %412 = arith.addf %411, %11 : vector<8x32xf32>
    %413 = vector.extract_strided_slice %377 {offsets = [0, 64], sizes = [8, 32], strides = [1, 1]} : vector<8x96xf32> to vector<8x32xf32>
    %414 = arith.addf %413, %14 : vector<8x32xf32>
    %415 = arith.mulf %409, %414 : vector<8x32xf32>
    %416 = arith.addf %412, %415 : vector<8x32xf32>
    %417 = math.tanh %416 : vector<8x32xf32>
    %cst_64 = arith.constant 1.000000e+00 : f32
    %418 = vector.broadcast %cst_64 : f32 to vector<8x32xf32>
    %419 = arith.subf %418, %410 : vector<8x32xf32>
    %420 = arith.mulf %419, %417 : vector<8x32xf32>
    %421 = arith.mulf %410, %372 : vector<8x32xf32>
    %422 = arith.addf %420, %421 : vector<8x32xf32>
    %c0_65 = arith.constant 0 : index
    %c0_66 = arith.constant 0 : index
    %423 = vector.load %arg8[%c0_65, %c0_66] : memref<32x128xf32, #tpu.memory_space<vmem>>, vector<32x128xf32>
    %cst_67 = arith.constant dense<0.000000e+00> : vector<8x128xf32>
    %424 = tpu.matmul %422, %423, %cst_67 {dimension_numbers = #tpu.dot_dimension_numbers<[1], [0], [0], [1], [0, 0, 1, 1], [], []>} : vector<8x32xf32>, vector<32x128xf32>, vector<8x128xf32> -> vector<8x128xf32>
    %c0_68 = arith.constant 0 : index
    %c0_69 = arith.constant 0 : index
    %425 = vector.load %arg9[%c0_68, %c0_69] : memref<1x128xf32, #tpu.memory_space<vmem>>, vector<1x128xf32>
    %426 = vector.broadcast %425 : vector<1x128xf32> to vector<8x128xf32>
    %427 = arith.addf %424, %426 : vector<8x128xf32>
    %c0_70 = arith.constant 0 : index
    %c0_71 = arith.constant 0 : index
    %428 = vector.load %arg10[%c0_70, %c0_71] : memref<8x128xf32, #tpu.memory_space<vmem>>, vector<8x128xf32>
    tpu.vector_store %arg10[%c0_70, %c0_71], %427 {strides = array<i32>} : memref<8x128xf32, #tpu.memory_space<vmem>>, vector<8x128xf32>,
    return
  }
}

</mosaic_0001>

<bundles_post_ra>
// kernel: forecasting_grpo_forward.1
= control target key start
LH: loop header
LB: loop body
LE: loop exit
PB: predicated region body
PF: predicated region fallthrough
CT: control target
= control target key end

     0   :  { %v2535_v3 = vmov 0.0   ;;  %vm90_vm0 = vcmask 64512   ;;  %s2536_s28 = smov 64   ;;  %s2537_s17 = smov 96   ;;  %v2538_v49 = vmov 0.0|0.0   ;;  %vm2540_vm1 = vmmov 0   ;;  %s3100_s2 = inlined_call_operand.vmem [shape: f32[64,192], index: 2, kind: input, shape index: {}]   ;;  %s3101_s1 = inlined_call_operand.vmem [shape: f32[8,96], index: 1, kind: input, shape index: {}]   ;;  %s3102_s0 = inlined_call_operand.vmem [shape: f32[64,8], index: 0, kind: input, shape index: {}]   ;;  %s3103_s4 = inlined_call_operand.vmem [shape: f32[1,32], index: 4, kind: input, shape index: {}]   ;;  %s3104_s3 = inlined_call_operand.vmem [shape: f32[1,96], index: 3, kind: input, shape index: {}]   ;;  %s3105_s7 = inlined_call_operand.vmem [shape: f32[1,32], index: 7, kind: input, shape index: {}]   ;;  %s3106_s5 = inlined_call_operand.vmem [shape: f32[32,96], index: 5, kind: input, shape index: {}]   ;;  %s3107_s6 = inlined_call_operand.vmem [shape: f32[1,96], index: 6, kind: input, shape index: {}]   ;;  %s3108_s8 = inlined_call_operand.vmem [shape: f32[32,128], index: 8, kind: input, shape index: {}]   ;;  %s3109_s9 = inlined_call_operand.vmem [shape: f32[1,128], index: 9, kind: input, shape index: {}]   ;;  %s3110_s10 = inlined_call_operand.vmem [shape: f32[8,128], index: 10, kind: output, shape index: {}]  }
   0x1   :  { %v36_v0 = vld [vmem:[%s3100_s2 + $0x8] sm:$0xff]  ;;  %v38_v1 = vld [vmem:[%s3100_s2 + $0x18] sm:$0xff]  ;;  %v35_v2 = vld [vmem:[%s3100_s2] sm:$0xff]  ;;  %288 = vmatprep.mubr.f32.mxu1 %v2535_v3  ;;  %s2539_s11 = smov 32   ;;  %vm328_vm2 = vcmask 261120   ;;  %vm220_vm3 = vcmask 523264  }
   0x2   :  { %v2606_v4 = vpack.c.bf16 %v38_v1, %v36_v0  ;;  %v37_v5 = vld [vmem:[%s3100_s2 + $0x10] sm:$0xff]  ;;  %v40_v6 = vld [vmem:[%s3100_s2 + $0x28] sm:$0xff]  ;;  %v42_v7 = vld [vmem:[%s3100_s2 + $0x38] sm:$0xff] }
   0x3   :  { %v2617_v8 = vpack.c.bf16 %v37_v5, %v35_v2  ;;  %v2619_v9 = vpack.c.bf16 %v42_v7, %v40_v6  ;;  %v39_v10 = vld [vmem:[%s3100_s2 + $0x20] sm:$0xff]  ;;  %v41_v11 = vld [vmem:[%s3100_s2 + $0x30] sm:$0xff]  ;;  %v44_v12 = vld [vmem:[%s3100_s2 + $0x48] sm:$0xff] }
   0x4   :  { %2250 = vmatprep.subr.bf16.mxu1 %v2606_v4  ;;  %v46_v13 = vld [vmem:[%s3100_s2 + $0x58] sm:$0xff]  ;;  %v2635_v14 = vpack.c.bf16 %v41_v11, %v39_v10  ;;  %v82_v15 = vld [vmem:[%s3101_s1] sm:$0xff]  ;;  %v45_v19 = vld [vmem:[%s3100_s2 + $0x50] sm:$0xff] }
   0x5   :  { %2252 = vmatpush1.bf16.msra.mxu1 %v2617_v8  ;;  %v74_v16 = vld [vmem:[%s3102_s0] sm:$0xff]  ;;  %v2644_v17 = vpack.c.bf16 %v46_v13, %v44_v12  ;;  %2136 = vmatprep.subr.mxu0 %v82_v15  ;;  %v75_v20 = vld [vmem:[%s3102_s0 + $0x8] sm:$0xff]  ;;  %v50_v22 = vld [vmem:[%s3100_s2 + $0x78] sm:$0xff] }
   0x6   :  { %2254 = vmatprep.subr.bf16.mxu1 %v2619_v9  ;;  %v43_v18 = vld [vmem:[%s3100_s2 + $0x40] sm:$0xff]  ;;  %2137 = vmatpush3.msra.mxu0 %v82_v15  ;;  %v48_v21 = vld [vmem:[%s3100_s2 + $0x68] sm:$0xff]  ;;  %v49_v27 = vld [vmem:[%s3100_s2 + $0x70] sm:$0xff] }
   0x7   :  { %2138 = vmatprep.mubr.msk.f32.mxu0 %vm90_vm0, %v74_v16  ;;  %v2037_v23 = vld [vmem:[%s3103_s4] ss:$0 sm:$0xff]  ;;  %v2668_v24 = vpack.c.bf16 %v45_v19, %v43_v18  ;;  %v2671_v25 = vpack.c.bf16 %v50_v22, %v48_v21  ;;  %v76_v47 = vld [vmem:[%s3102_s0 + $0x10] sm:$0xff]  ;;  %v77_v48 = vld [vmem:[%s3102_s0 + $0x18] sm:$0xff]  ;;  %2265 = vmatprep.subr.bf16.mxu0 %v2538_v49 }
   0x8   :  { %2139 = vmatmul.mubr.msk.f32.vlgmr.msra.gmra.mrb[0].mxu0 %vm90_vm0, %v75_v20  ;;  %302 = vrot.lane.b32.xlu0 %v2037_v23, %s2536_s28  ;;  %v47_v26 = vld [vmem:[%s3100_s2 + $0x60] sm:$0xff]  ;;  %v52_v51 = vld [vmem:[%s3106_s5 + $0x8] sm:$0xff]  ;;  %v53_v55 = vld [vmem:[%s3106_s5 + $0x10] sm:$0xff] }
   0x9   :  { %2256 = vmatpush1.bf16.msra.mxu1 %v2635_v14  ;;  %v2680_v28 = vpack.c.bf16 %v49_v27, %v47_v26  ;;  %v2703_v35 = vld [vmem:[%s3104_s3] ss:$0 sm:$0xff]  ;;  %2141 = vmatprep.mubr.msk.f32.mxu0 %vm90_vm0, %v76_v47  ;;  %v54_v56 = vld [vmem:[%s3106_s5 + $0x18] sm:$0xff]  ;;  %v79_v57 = vld [vmem:[%s3102_s0 + $0x28] sm:$0xff] }
   0xa   :  { %2258 = vmatprep.subr.bf16.mxu1 %v2644_v17  ;;  %v51_v50 = vld [vmem:[%s3106_s5] sm:$0xff]  ;;  %v2743_v58 = vpack.c.bf16 %v54_v56, %v53_v55  ;;  %v80_v59 = vld [vmem:[%s3102_s0 + $0x30] sm:$0xff]  ;;  %v81_v60 = vld [vmem:[%s3102_s0 + $0x38] sm:$0xff] }
   0xb   :  { %v78_v52 = vld [vmem:[%s3102_s0 + $0x20] sm:$0xff]  ;;  %v2727_v54 = vpack.c.bf16 %v52_v51, %v51_v50 }
   0xc   :  { %v2039_v53 = vld [vmem:[%s3105_s7] ss:$0 sm:$0xff]  ;;  %2142 = vmatmul.mubr.msk.f32.gmra.mrb[2].mxu0 %vm90_vm0, %v77_v48 }
   0xd   :  { %2260 = vmatpush1.bf16.msra.mxu1 %v2668_v24  ;;  %2267 = vmatpush3.bf16.msra.mxu0 %v2727_v54  ;;  %v2793_v23 = vld [vmem:[%s3107_s6] ss:$0 sm:$0xff] }
   0xe   :  { %2262 = vmatprep.subr.bf16.mxu1 %v2671_v25  ;;  %2144 = vmatprep.mubr.msk.f32.mxu0 %vm90_vm0, %v78_v52 }
   0xf   :  { %2268 = vmatprep.subr.bf16.mxu0 %v2538_v49 }
  0x10   :  { %2145 = vmatmul.mubr.msk.f32.gmra.mrb[4].mxu0 %vm90_vm0, %v79_v57 }
  0x11   :  { %2264 = vmatpush1.bf16.msra.mxu1 %v2680_v28  ;;  %2270 = vmatpush3.bf16.msra.mxu0 %v2743_v58 }
  0x12   :  { %2272 = vmatprep.subr.bf16.mxu1 %v2606_v4  ;;  %2147 = vmatprep.mubr.msk.f32.mxu0 %vm90_vm0, %v80_v59 }
  0x13   :  { %2287 = vmatprep.subr.bf16.mxu0 %v2538_v49 }
  0x14   :  { %289 = vmatmul.mubr.f32.vlgmr.msra.gmra.mrb[0].mxu1 %v2535_v3  ;;  %2148 = vmatmul.mubr.msk.f32.gmra.mrb[6].mxu0 %vm90_vm0, %v81_v60 }
  0x15   :  { %2274 = vmatpush1.bf16.msra.mxu1 %v2617_v8  ;;  %510 = vmatprep.mubr.f32.mxu1 %v2535_v3 }
  0x16   :  { %2276 = vmatprep.subr.bf16.mxu1 %v2619_v9  ;;  %2158 = vmatprep.mubr.msk.f32.mxu0 %vm2540_vm1, %v2535_v3 }
  0x19   :  { %2278 = vmatpush1.bf16.msra.mxu1 %v2635_v14 }
  0x1a   :  { %2280 = vmatprep.subr.bf16.mxu1 %v2644_v17 }
  0x1d   :  { %2282 = vmatpush1.bf16.msra.mxu1 %v2668_v24 }
  0x1e   :  { %2284 = vmatprep.subr.bf16.mxu1 %v2671_v25 }
  0x21   :  { %2286 = vmatpush1.bf16.msra.mxu1 %v2680_v28 }
  0x22   :  { %2309 = vmatprep.subr.bf16.mxu1 %v2538_v49 }
  0x7a   :  { %v2696_v31 = vpop.permute.xlu0 %302 }
  0xdb   :  { %v2694_v29 = vpop.f32.mrb[0].mxu0 }
  0xdc   :  { %v181_v30 = vpop.f32.mrb[1].mxu0  ;;  %v187_v51 = vadd.f32 %v2694_v29, %v2703_v35 }
  0xdd   :  { %v182_v36 = vadd.f32 %v2703_v35, %v181_v30 }
  0xdf   :  { %v2770_v6 = vpop.f32.mrb[2].mxu0 }
  0xe0   :  { %v2772_v7 = vpop.f32.mrb[3].mxu0 }
  0xe3   :  { %v2774_v10 = vpop.f32.mrb[4].mxu0 }
  0xe4   :  { %v2776_v11 = vpop.f32.mrb[5].mxu0 }
  0xe7   :  { %v290_v32 = vpop.f32.mrb[0].mxu1  ;;  %v2778_v12 = vpop.f32.mrb[6].mxu0 }
  0xe8   :  { %v305_v33 = vadd.f32 %v2696_v31, %v290_v32  ;;  %v292_v34 = vpop.f32.mrb[1].mxu1  ;;  %v295_v37 = vadd.f32 %v290_v32, %v182_v36  ;;  %v2780_v13 = vpop.f32.mrb[7].mxu0 }
  0xea   :  { %307 = vrot.lane.b32.xlu0 %v305_v33, %s2536_s28  ;;  %v2049_v38 = vmul.f32 -1.442695, %v295_v37 }
  0xec   :  { %2437 = vpow2.f32 %v2049_v38 }
  0xf6   :  { %v2438_v39 = vpop.eup %2437 }
  0xf7   :  { %v299_v40 = vadd.f32 1.0, %v2438_v39 }
  0xf9   :  { %2439 = vrcp.f32 %v299_v40 }
 0x103   :  { %v2440_v41 = vpop.eup %2439 }
 0x104   :  { %v317_v61 = vsub.f32 1.0, %v2440_v41  ;;  %v323_v63 = vmul.f32 0.0, %v2440_v41 }
 0x15c   :  { %v308_v42 = vpop.permute.xlu0 %307 }
 0x15d   :  { %v310_v43 = vmul.f32 %v2440_v41, %v308_v42 }
 0x15f   :  { %312 = vrot.lane.b32.xlu1 %v310_v43, %s2536_s28 }
 0x1d1   :  { %v313_v44 = vpop.permute.xlu1 %312 }
 0x1d2   :  { %v315_v45 = vadd.f32 %v313_v44, %v182_v36 }
 0x1d4   :  { %2441 = vtanh.f32 %v315_v45 }
 0x1de   :  { %v2442_v46 = vpop.eup %2441 }
 0x1df   :  { %319 = vrot.lane.b32.xlu1 %v2442_v46, %s2537_s17 }
 0x1e3   :  { %418 = vrot.lane.b32.xlu1 %v2039_v53, %s2539_s11 }
 0x1e7   :  { %405 = vrot.lane.b32.xlu1 %v292_v34, %s2539_s11 }
 0x251   :  { %v320_v62 = vpop.permute.xlu1 %319 }
 0x252   :  { %v322_v0 = vmul.f32 %v320_v62, %v317_v61 }
 0x254   :  { %v2761_v1 = vadd.f32 %v323_v63, %v322_v0 }
 0x255   :  { %v2765_v2 = vpop.permute.xlu1 %418 }
 0x256   :  { %326 = vrot.lane.b32.xlu0 %v2761_v1, %s2537_s17  ;;  %v421_v5 = vadd.f32 %v2765_v2, %v292_v34 }
 0x259   :  { %v406_v18 = vpop.permute.xlu1 %405 }
 0x25a   :  { %403 = vrot.lane.b32.xlu0 %v290_v32, %s2539_s11 }
 0x25e   :  { %423 = vrot.lane.b32.xlu0 %v421_v5, %s2537_s17 }
 0x2c8   :  { %v327_v15 = vpop.permute.xlu0 %326 }
 0x2c9   :  { %2159 = vmatmul.mubr.msk.f32.vlgmr.msra.gmra.mrb[8].mxu0 %vm328_vm2, %v327_v15 }
 0x2ca   :  { %2289 = vmatpush3.bf16.msra.mxu0 %v2727_v54  ;;  %2169 = vmatprep.mubr.msk.f32.mxu0 %vm2540_vm1, %v2535_v3 }
 0x2cb   :  { %2290 = vmatprep.subr.bf16.mxu0 %v2538_v49 }
 0x2cc   :  { %v404_v16 = vpop.permute.xlu0 %403 }
 0x2cd   :  { %v407_v19 = vsel %vm328_vm2, %v404_v16, %v406_v18 }
 0x2ce   :  { %2292 = vmatpush3.bf16.msra.mxu0 %v2743_v58 }
 0x2cf   :  { %2294 = vmatprep.subr.bf16.mxu0 %v2606_v4 }
 0x2d0   :  { %v424_v34 = vpop.permute.xlu0 %423 }
 0x39c   :  { %v397_v20 = vpop.f32.mrb[8].mxu0 }
 0x39d   :  { %v409_v21 = vadd.f32 %v407_v19, %v397_v20  ;;  %v2160_v22 = vpop.f32.mrb[9].mxu0  ;;  %v417_v37 = vadd.f32 %v2793_v23, %v397_v20 }
 0x39f   :  { %v410_v26 = vadd.f32 %v2793_v23, %v409_v21 }
 0x3a1   :  { %v2051_v27 = vmul.f32 -1.442695, %v410_v26 }
 0x3a3   :  { %2443 = vpow2.f32 %v2051_v27 }
 0x3ad   :  { %v2444_v30 = vpop.eup %2443 }
 0x3ae   :  { %v414_v32 = vadd.f32 1.0, %v2444_v30 }
 0x3b0   :  { %2445 = vrcp.f32 %v414_v32 }
 0x3ba   :  { %v2446_v33 = vpop.eup %2445 }
 0x3bb   :  { %v426_v36 = vmul.f32 %v2446_v33, %v424_v34  ;;  %v433_v41 = vsub.f32 1.0, %v2446_v33  ;;  %v439_v43 = vmul.f32 0.0, %v2446_v33 }
 0x3bd   :  { %428 = vrot.lane.b32.xlu1 %v426_v36, %s2536_s28 }
 0x42f   :  { %v429_v38 = vpop.permute.xlu1 %428 }
 0x430   :  { %v431_v39 = vadd.f32 %v429_v38, %v417_v37 }
 0x432   :  { %2447 = vtanh.f32 %v431_v39 }
 0x43c   :  { %v2448_v40 = vpop.eup %2447 }
 0x43d   :  { %435 = vrot.lane.b32.xlu0 %v2448_v40, %s2537_s17 }
 0x4af   :  { %v436_v42 = vpop.permute.xlu0 %435 }
 0x4b0   :  { %v438_v44 = vmul.f32 %v436_v42, %v433_v41 }
 0x4b2   :  { %v2799_v45 = vadd.f32 %v439_v43, %v438_v44 }
 0x4b4   :  { %v442_v46 = vsel %vm328_vm2, %v327_v15, %v2799_v45 }
 0x4b5   :  { %2052 = vmatmul.mubr.msk.f32.vlgmr.msra.gmra.mrb[2].mxu1 %vm220_vm3, %v442_v46 }
 0x4b6   :  { %2311 = vmatpush3.bf16.msra.mxu1 %v2727_v54  ;;  %2180 = vmatprep.mubr.msk.f32.mxu1 %vm2540_vm1, %v2535_v3 }
 0x4b7   :  { %2312 = vmatprep.subr.bf16.mxu1 %v2538_v49 }
 0x4ba   :  { %2314 = vmatpush3.bf16.msra.mxu1 %v2743_v58 }
 0x4bb   :  { %2316 = vmatprep.subr.bf16.mxu1 %v2606_v4 }
 0x588   :  { %v512_v47 = vpop.f32.mrb[2].mxu1 }
 0x589   :  { %v524_v48 = vadd.f32 %v512_v47, %v2696_v31  ;;  %v514_v50 = vpop.f32.mrb[3].mxu1  ;;  %v517_v52 = vadd.f32 %v512_v47, %v187_v51 }
 0x58a   :  { %v636_v29 = vadd.f32 %v514_v50, %v2765_v2 }
 0x58b   :  { %526 = vrot.lane.b32.xlu1 %v524_v48, %s2536_s28  ;;  %v2053_v53 = vmul.f32 -1.442695, %v517_v52 }
 0x58d   :  { %2449 = vpow2.f32 %v2053_v53  ;;  %v192_v53 = vadd.f32 %v2703_v35, %v2772_v7 }
 0x597   :  { %v2450_v55 = vpop.eup %2449 }
 0x598   :  { %v521_v56 = vadd.f32 1.0, %v2450_v55 }
 0x59a   :  { %2451 = vrcp.f32 %v521_v56 }
 0x5a4   :  { %v2452_v57 = vpop.eup %2451 }
 0x5a5   :  { %v536_v0 = vsub.f32 1.0, %v2452_v57  ;;  %v542_v15 = vmul.f32 %v2452_v57, %v2761_v1 }
 0x5fd   :  { %v527_v59 = vpop.permute.xlu1 %526 }
 0x5fe   :  { %v529_v60 = vmul.f32 %v2452_v57, %v527_v59 }
 0x600   :  { %531 = vrot.lane.b32.xlu0 %v529_v60, %s2536_s28 }
 0x672   :  { %v532_v61 = vpop.permute.xlu0 %531 }
 0x673   :  { %v534_v62 = vadd.f32 %v532_v61, %v187_v51 }
 0x675   :  { %2453 = vtanh.f32 %v534_v62 }
 0x67f   :  { %v2454_v63 = vpop.eup %2453 }
 0x680   :  { %538 = vrot.lane.b32.xlu1 %v2454_v63, %s2537_s17 }
 0x684   :  { %621 = vrot.lane.b32.xlu1 %v512_v47, %s2539_s11 }
 0x688   :  { %638 = vrot.lane.b32.xlu1 %v636_v29, %s2537_s17 }
 0x6f2   :  { %v539_v5 = vpop.permute.xlu1 %538 }
 0x6f3   :  { %v541_v16 = vmul.f32 %v539_v5, %v536_v0 }
 0x6f5   :  { %v2820_v18 = vadd.f32 %v542_v15, %v541_v16 }
 0x6f6   :  { %v622_v20 = vpop.permute.xlu1 %621 }
 0x6f7   :  { %545 = vrot.lane.b32.xlu0 %v2820_v18, %s2537_s17 }
 0x6fa   :  { %v639_v37 = vpop.permute.xlu1 %638 }
 0x6fb   :  { %623 = vrot.lane.b32.xlu0 %v514_v50, %s2539_s11 }
 0x769   :  { %v546_v19 = vpop.permute.xlu0 %545 }
 0x76a   :  { %2170 = vmatmul.mubr.msk.f32.vlgmr.msra.gmra.mrb[10].mxu0 %vm328_vm2, %v546_v19 }
 0x76b   :  { %2296 = vmatpush1.bf16.msra.mxu0 %v2617_v8  ;;  %725 = vmatprep.mubr.f32.mxu0 %v2535_v3 }
 0x76c   :  { %2298 = vmatprep.subr.bf16.mxu0 %v2619_v9 }
 0x76d   :  { %v624_v1 = vpop.permute.xlu0 %623 }
 0x76e   :  { %v625_v21 = vsel %vm328_vm2, %v622_v20, %v624_v1 }
 0x76f   :  { %2300 = vmatpush1.bf16.msra.mxu0 %v2635_v14 }
 0x770   :  { %2302 = vmatprep.subr.bf16.mxu0 %v2644_v17 }
 0x773   :  { %2304 = vmatpush1.bf16.msra.mxu0 %v2668_v24 }
 0x774   :  { %2306 = vmatprep.subr.bf16.mxu0 %v2671_v25 }
 0x777   :  { %2308 = vmatpush1.bf16.msra.mxu0 %v2680_v28 }
 0x778   :  { %2331 = vmatprep.subr.bf16.mxu0 %v2538_v49 }
 0x83d   :  { %v615_v22 = vpop.f32.mrb[10].mxu0 }
 0x83e   :  { %v627_v26 = vadd.f32 %v625_v21, %v615_v22  ;;  %v2171_v27 = vpop.f32.mrb[11].mxu0  ;;  %v635_v39 = vadd.f32 %v2793_v23, %v615_v22 }
 0x840   :  { %v628_v30 = vadd.f32 %v2793_v23, %v627_v26 }
 0x842   :  { %v2055_v32 = vmul.f32 -1.442695, %v628_v30 }
 0x844   :  { %2455 = vpow2.f32 %v2055_v32 }
 0x84e   :  { %v2456_v33 = vpop.eup %2455 }
 0x84f   :  { %v632_v34 = vadd.f32 1.0, %v2456_v33 }
 0x851   :  { %2457 = vrcp.f32 %v632_v34 }
 0x85b   :  { %v2458_v36 = vpop.eup %2457 }
 0x85c   :  { %v641_v38 = vmul.f32 %v2458_v36, %v639_v37  ;;  %v648_v43 = vsub.f32 1.0, %v2458_v36  ;;  %v654_v46 = vmul.f32 %v2458_v36, %v2799_v45 }
 0x85e   :  { %643 = vrot.lane.b32.xlu0 %v641_v38, %s2536_s28 }
 0x8d0   :  { %v644_v40 = vpop.permute.xlu0 %643 }
 0x8d1   :  { %v646_v41 = vadd.f32 %v644_v40, %v635_v39 }
 0x8d3   :  { %2459 = vtanh.f32 %v646_v41 }
 0x8dd   :  { %v2460_v42 = vpop.eup %2459 }
 0x8de   :  { %650 = vrot.lane.b32.xlu1 %v2460_v42, %s2537_s17 }
 0x950   :  { %v651_v44 = vpop.permute.xlu1 %650 }
 0x951   :  { %v653_v47 = vmul.f32 %v651_v44, %v648_v43 }
 0x953   :  { %v2841_v48 = vadd.f32 %v654_v46, %v653_v47 }
 0x955   :  { %v657_v50 = vsel %vm328_vm2, %v546_v19, %v2841_v48 }
 0x956   :  { %2056 = vmatmul.mubr.msk.f32.vlgmr.msra.gmra.mrb[12].mxu0 %vm220_vm3, %v657_v50 }
 0x957   :  { %2333 = vmatpush3.bf16.msra.mxu0 %v2727_v54  ;;  %2191 = vmatprep.mubr.msk.f32.mxu0 %vm2540_vm1, %v2535_v3 }
 0x958   :  { %2334 = vmatprep.subr.bf16.mxu0 %v2538_v49 }
 0x95b   :  { %2336 = vmatpush3.bf16.msra.mxu0 %v2743_v58 }
 0x95c   :  { %2338 = vmatprep.subr.bf16.mxu0 %v2606_v4 }
 0xa29   :  { %v727_v45 = vpop.f32.mrb[12].mxu0 }
 0xa2a   :  { %v739_v51 = vadd.f32 %v727_v45, %v2696_v31  ;;  %v729_v52 = vpop.f32.mrb[13].mxu0  ;;  %v732_v55 = vadd.f32 %v727_v45, %v192_v53 }
 0xa2b   :  { %v851_v7 = vadd.f32 %v729_v52, %v2765_v2 }
 0xa2c   :  { %741 = vrot.lane.b32.xlu0 %v739_v51, %s2536_s28  ;;  %v2057_v56 = vmul.f32 -1.442695, %v732_v55  ;;  %v197_v55 = vadd.f32 %v2770_v6, %v2703_v35 }
 0xa2e   :  { %2461 = vpow2.f32 %v2057_v56 }
 0xa38   :  { %v2462_v57 = vpop.eup %2461 }
 0xa39   :  { %v736_v59 = vadd.f32 1.0, %v2462_v57 }
 0xa3b   :  { %2463 = vrcp.f32 %v736_v59 }
 0xa45   :  { %v2464_v60 = vpop.eup %2463 }
 0xa46   :  { %v751_v5 = vsub.f32 1.0, %v2464_v60  ;;  %v757_v16 = vmul.f32 %v2464_v60, %v2820_v18 }
 0xa9e   :  { %v742_v61 = vpop.permute.xlu0 %741 }
 0xa9f   :  { %v744_v62 = vmul.f32 %v2464_v60, %v742_v61 }
 0xaa1   :  { %746 = vrot.lane.b32.xlu1 %v744_v62, %s2536_s28 }
 0xb13   :  { %v747_v63 = vpop.permute.xlu1 %746 }
 0xb14   :  { %v749_v29 = vadd.f32 %v747_v63, %v192_v53 }
 0xb16   :  { %2465 = vtanh.f32 %v749_v29 }
 0xb20   :  { %v2466_v0 = vpop.eup %2465 }
 0xb21   :  { %753 = vrot.lane.b32.xlu0 %v2466_v0, %s2537_s17 }
 0xb25   :  { %836 = vrot.lane.b32.xlu0 %v727_v45, %s2539_s11 }
 0xb29   :  { %853 = vrot.lane.b32.xlu0 %v851_v7, %s2537_s17 }
 0xb93   :  { %v754_v15 = vpop.permute.xlu0 %753 }
 0xb94   :  { %v756_v19 = vmul.f32 %v754_v15, %v751_v5 }
 0xb96   :  { %v2862_v1 = vadd.f32 %v757_v16, %v756_v19 }
 0xb97   :  { %v837_v21 = vpop.permute.xlu0 %836 }
 0xb98   :  { %760 = vrot.lane.b32.xlu1 %v2862_v1, %s2537_s17 }
 0xb9b   :  { %v854_v38 = vpop.permute.xlu0 %853 }
 0xb9c   :  { %838 = vrot.lane.b32.xlu1 %v729_v52, %s2539_s11 }
 0xc0a   :  { %v761_v20 = vpop.permute.xlu1 %760 }
 0xc0b   :  { %2181 = vmatmul.mubr.msk.f32.vlgmr.msra.gmra.mrb[4].mxu1 %vm328_vm2, %v761_v20 }
 0xc0c   :  { %2318 = vmatpush1.bf16.msra.mxu1 %v2617_v8  ;;  %940 = vmatprep.mubr.f32.mxu1 %v2535_v3 }
 0xc0d   :  { %2320 = vmatprep.subr.bf16.mxu1 %v2619_v9 }
 0xc0e   :  { %v839_v18 = vpop.permute.xlu1 %838 }
 0xc0f   :  { %v840_v22 = vsel %vm328_vm2, %v837_v21, %v839_v18 }
 0xc10   :  { %2322 = vmatpush1.bf16.msra.mxu1 %v2635_v14 }
 0xc11   :  { %2324 = vmatprep.subr.bf16.mxu1 %v2644_v17 }
 0xc14   :  { %2326 = vmatpush1.bf16.msra.mxu1 %v2668_v24 }
 0xc15   :  { %2328 = vmatprep.subr.bf16.mxu1 %v2671_v25 }
 0xc18   :  { %2330 = vmatpush1.bf16.msra.mxu1 %v2680_v28 }
 0xc19   :  { %2353 = vmatprep.subr.bf16.mxu1 %v2538_v49 }
 0xcde   :  { %v830_v26 = vpop.f32.mrb[4].mxu1 }
 0xcdf   :  { %v842_v27 = vadd.f32 %v840_v22, %v830_v26  ;;  %v2182_v30 = vpop.f32.mrb[5].mxu1  ;;  %v850_v40 = vadd.f32 %v2793_v23, %v830_v26 }
 0xce1   :  { %v843_v32 = vadd.f32 %v2793_v23, %v842_v27 }
 0xce3   :  { %v2059_v33 = vmul.f32 -1.442695, %v843_v32 }
 0xce5   :  { %2467 = vpow2.f32 %v2059_v33 }
 0xcef   :  { %v2468_v34 = vpop.eup %2467 }
 0xcf0   :  { %v847_v36 = vadd.f32 1.0, %v2468_v34 }
 0xcf2   :  { %2469 = vrcp.f32 %v847_v36 }
 0xcfc   :  { %v2470_v37 = vpop.eup %2469 }
 0xcfd   :  { %v856_v39 = vmul.f32 %v2470_v37, %v854_v38  ;;  %v863_v44 = vsub.f32 1.0, %v2470_v37  ;;  %v869_v47 = vmul.f32 %v2470_v37, %v2841_v48 }
 0xcff   :  { %858 = vrot.lane.b32.xlu1 %v856_v39, %s2536_s28 }
 0xd71   :  { %v859_v41 = vpop.permute.xlu1 %858 }
 0xd72   :  { %v861_v42 = vadd.f32 %v859_v41, %v850_v40 }
 0xd74   :  { %2471 = vtanh.f32 %v861_v42 }
 0xd7e   :  { %v2472_v43 = vpop.eup %2471 }
 0xd7f   :  { %865 = vrot.lane.b32.xlu0 %v2472_v43, %s2537_s17 }
 0xdf1   :  { %v866_v46 = vpop.permute.xlu0 %865 }
 0xdf2   :  { %v868_v50 = vmul.f32 %v866_v46, %v863_v44 }
 0xdf4   :  { %v2883_v45 = vadd.f32 %v869_v47, %v868_v50 }
 0xdf6   :  { %v872_v51 = vsel %vm328_vm2, %v761_v20, %v2883_v45 }
 0xdf7   :  { %2060 = vmatmul.mubr.msk.f32.vlgmr.msra.gmra.mrb[6].mxu1 %vm220_vm3, %v872_v51 }
 0xdf8   :  { %2355 = vmatpush3.bf16.msra.mxu1 %v2727_v54  ;;  %2202 = vmatprep.mubr.msk.f32.mxu1 %vm2540_vm1, %v2535_v3 }
 0xdf9   :  { %2356 = vmatprep.subr.bf16.mxu1 %v2538_v49 }
 0xdfc   :  { %2358 = vmatpush3.bf16.msra.mxu1 %v2743_v58 }
 0xdfd   :  { %2360 = vmatprep.subr.bf16.mxu1 %v2606_v4 }
 0xeca   :  { %v942_v48 = vpop.f32.mrb[6].mxu1 }
 0xecb   :  { %v954_v52 = vadd.f32 %v942_v48, %v2696_v31  ;;  %v944_v53 = vpop.f32.mrb[7].mxu1  ;;  %v947_v56 = vadd.f32 %v942_v48, %v197_v55 }
 0xecc   :  { %v1066_v6 = vadd.f32 %v944_v53, %v2765_v2 }
 0xecd   :  { %956 = vrot.lane.b32.xlu1 %v954_v52, %s2536_s28  ;;  %v2061_v57 = vmul.f32 -1.442695, %v947_v56 }
 0xecf   :  { %2473 = vpow2.f32 %v2061_v57 }
 0xed9   :  { %v2474_v59 = vpop.eup %2473 }
 0xeda   :  { %v951_v60 = vadd.f32 1.0, %v2474_v59 }
 0xedc   :  { %2475 = vrcp.f32 %v951_v60 }
 0xee6   :  { %v2476_v61 = vpop.eup %2475 }
 0xee7   :  { %v966_v5 = vsub.f32 1.0, %v2476_v61  ;;  %v972_v16 = vmul.f32 %v2476_v61, %v2862_v1 }
 0xf3f   :  { %v957_v62 = vpop.permute.xlu1 %956 }
 0xf40   :  { %v959_v63 = vmul.f32 %v2476_v61, %v957_v62 }
 0xf42   :  { %961 = vrot.lane.b32.xlu0 %v959_v63, %s2536_s28 }
 0xfb4   :  { %v962_v29 = vpop.permute.xlu0 %961 }
 0xfb5   :  { %v964_v0 = vadd.f32 %v962_v29, %v197_v55  ;;  %v202_v55 = vadd.f32 %v2703_v35, %v2776_v11 }
 0xfb7   :  { %2477 = vtanh.f32 %v964_v0 }
 0xfc1   :  { %v2478_v7 = vpop.eup %2477 }
 0xfc2   :  { %968 = vrot.lane.b32.xlu1 %v2478_v7, %s2537_s17 }
 0xfc6   :  { %1051 = vrot.lane.b32.xlu1 %v942_v48, %s2539_s11 }
 0xfca   :  { %1068 = vrot.lane.b32.xlu1 %v1066_v6, %s2537_s17 }
0x1034   :  { %v969_v15 = vpop.permute.xlu1 %968 }
0x1035   :  { %v971_v19 = vmul.f32 %v969_v15, %v966_v5 }
0x1037   :  { %v2904_v20 = vadd.f32 %v972_v16, %v971_v19 }
0x1038   :  { %v1052_v21 = vpop.permute.xlu1 %1051 }
0x1039   :  { %975 = vrot.lane.b32.xlu0 %v2904_v20, %s2537_s17 }
0x103c   :  { %v1069_v38 = vpop.permute.xlu1 %1068 }
0x103d   :  { %1053 = vrot.lane.b32.xlu0 %v944_v53, %s2539_s11 }
0x10ab   :  { %v976_v18 = vpop.permute.xlu0 %975 }
0x10ac   :  { %2192 = vmatmul.mubr.msk.f32.vlgmr.msra.gmra.mrb[14].mxu0 %vm328_vm2, %v976_v18 }
0x10ad   :  { %2340 = vmatpush1.bf16.msra.mxu0 %v2617_v8  ;;  %1155 = vmatprep.mubr.f32.mxu0 %v2535_v3 }
0x10ae   :  { %2342 = vmatprep.subr.bf16.mxu0 %v2619_v9 }
0x10af   :  { %v1054_v1 = vpop.permute.xlu0 %1053 }
0x10b0   :  { %v1055_v22 = vsel %vm328_vm2, %v1052_v21, %v1054_v1 }
0x10b1   :  { %2344 = vmatpush1.bf16.msra.mxu0 %v2635_v14 }
0x10b2   :  { %2346 = vmatprep.subr.bf16.mxu0 %v2644_v17 }
0x10b5   :  { %2348 = vmatpush1.bf16.msra.mxu0 %v2668_v24 }
0x10b6   :  { %2350 = vmatprep.subr.bf16.mxu0 %v2671_v25 }
0x10b9   :  { %2352 = vmatpush1.bf16.msra.mxu0 %v2680_v28 }
0x10ba   :  { %2375 = vmatprep.subr.bf16.mxu0 %v2538_v49 }
0x117f   :  { %v1045_v26 = vpop.f32.mrb[14].mxu0 }
0x1180   :  { %v1057_v27 = vadd.f32 %v1055_v22, %v1045_v26  ;;  %v2193_v30 = vpop.f32.mrb[15].mxu0  ;;  %v1065_v40 = vadd.f32 %v2793_v23, %v1045_v26 }
0x1182   :  { %v1058_v32 = vadd.f32 %v2793_v23, %v1057_v27 }
0x1184   :  { %v2063_v33 = vmul.f32 -1.442695, %v1058_v32 }
0x1186   :  { %2479 = vpow2.f32 %v2063_v33 }
0x1190   :  { %v2480_v34 = vpop.eup %2479 }
0x1191   :  { %v1062_v36 = vadd.f32 1.0, %v2480_v34 }
0x1193   :  { %2481 = vrcp.f32 %v1062_v36 }
0x119d   :  { %v2482_v37 = vpop.eup %2481 }
0x119e   :  { %v1071_v39 = vmul.f32 %v2482_v37, %v1069_v38  ;;  %v1078_v44 = vsub.f32 1.0, %v2482_v37  ;;  %v1084_v47 = vmul.f32 %v2482_v37, %v2883_v45 }
0x11a0   :  { %1073 = vrot.lane.b32.xlu0 %v1071_v39, %s2536_s28 }
0x1212   :  { %v1074_v41 = vpop.permute.xlu0 %1073 }
0x1213   :  { %v1076_v42 = vadd.f32 %v1074_v41, %v1065_v40 }
0x1215   :  { %2483 = vtanh.f32 %v1076_v42 }
0x121f   :  { %v2484_v43 = vpop.eup %2483 }
0x1220   :  { %1080 = vrot.lane.b32.xlu1 %v2484_v43, %s2537_s17 }
0x1292   :  { %v1081_v46 = vpop.permute.xlu1 %1080 }
0x1293   :  { %v1083_v50 = vmul.f32 %v1081_v46, %v1078_v44 }
0x1295   :  { %v2925_v51 = vadd.f32 %v1084_v47, %v1083_v50 }
0x1297   :  { %v1087_v48 = vsel %vm328_vm2, %v976_v18, %v2925_v51 }
0x1298   :  { %2064 = vmatmul.mubr.msk.f32.vlgmr.msra.gmra.mrb[16].mxu0 %vm220_vm3, %v1087_v48 }
0x1299   :  { %2377 = vmatpush3.bf16.msra.mxu0 %v2727_v54  ;;  %2213 = vmatprep.mubr.msk.f32.mxu0 %vm2540_vm1, %v2535_v3 }
0x129a   :  { %2378 = vmatprep.subr.bf16.mxu0 %v2538_v49 }
0x129d   :  { %2380 = vmatpush3.bf16.msra.mxu0 %v2743_v58 }
0x129e   :  { %2382 = vmatprep.subr.bf16.mxu0 %v2606_v4 }
0x136b   :  { %v1157_v45 = vpop.f32.mrb[16].mxu0 }
0x136c   :  { %v1169_v52 = vadd.f32 %v1157_v45, %v2696_v31  ;;  %v1159_v53 = vpop.f32.mrb[17].mxu0  ;;  %v1162_v56 = vadd.f32 %v1157_v45, %v202_v55 }
0x136d   :  { %v1281_v11 = vadd.f32 %v1159_v53, %v2765_v2 }
0x136e   :  { %1171 = vrot.lane.b32.xlu0 %v1169_v52, %s2536_s28  ;;  %v2065_v57 = vmul.f32 -1.442695, %v1162_v56 }
0x1370   :  { %2485 = vpow2.f32 %v2065_v57 }
0x137a   :  { %v2486_v59 = vpop.eup %2485 }
0x137b   :  { %v1166_v60 = vadd.f32 1.0, %v2486_v59 }
0x137d   :  { %2487 = vrcp.f32 %v1166_v60 }
0x1387   :  { %v2488_v61 = vpop.eup %2487 }
0x1388   :  { %v1181_v6 = vsub.f32 1.0, %v2488_v61  ;;  %v1187_v15 = vmul.f32 %v2488_v61, %v2904_v20 }
0x13e0   :  { %v1172_v62 = vpop.permute.xlu0 %1171 }
0x13e1   :  { %v1174_v63 = vmul.f32 %v2488_v61, %v1172_v62 }
0x13e3   :  { %1176 = vrot.lane.b32.xlu1 %v1174_v63, %s2536_s28 }
0x1455   :  { %v1177_v29 = vpop.permute.xlu1 %1176 }
0x1456   :  { %v1179_v0 = vadd.f32 %v1177_v29, %v202_v55 }
0x1458   :  { %2489 = vtanh.f32 %v1179_v0 }
0x1462   :  { %v2490_v7 = vpop.eup %2489 }
0x1463   :  { %1183 = vrot.lane.b32.xlu0 %v2490_v7, %s2537_s17 }
0x1467   :  { %1266 = vrot.lane.b32.xlu0 %v1157_v45, %s2539_s11 }
0x146b   :  { %1283 = vrot.lane.b32.xlu0 %v1281_v11, %s2537_s17 }
0x14d5   :  { %v1184_v5 = vpop.permute.xlu0 %1183 }
0x14d6   :  { %v1186_v16 = vmul.f32 %v1184_v5, %v1181_v6 }
0x14d8   :  { %v2946_v19 = vadd.f32 %v1187_v15, %v1186_v16 }
0x14d9   :  { %v1267_v1 = vpop.permute.xlu0 %1266 }
0x14da   :  { %1190 = vrot.lane.b32.xlu1 %v2946_v19, %s2537_s17 }
0x14dd   :  { %v1284_v37 = vpop.permute.xlu0 %1283 }
0x14de   :  { %1268 = vrot.lane.b32.xlu1 %v1159_v53, %s2539_s11  ;;  %v207_v53 = vadd.f32 %v2774_v10, %v2703_v35 }
0x154c   :  { %v1191_v18 = vpop.permute.xlu1 %1190 }
0x154d   :  { %2203 = vmatmul.mubr.msk.f32.vlgmr.msra.gmra.mrb[8].mxu1 %vm328_vm2, %v1191_v18 }
0x154e   :  { %2362 = vmatpush1.bf16.msra.mxu1 %v2617_v8  ;;  %1370 = vmatprep.mubr.f32.mxu1 %v2535_v3 }
0x154f   :  { %2364 = vmatprep.subr.bf16.mxu1 %v2619_v9 }
0x1550   :  { %v1269_v20 = vpop.permute.xlu1 %1268 }
0x1551   :  { %v1270_v21 = vsel %vm328_vm2, %v1267_v1, %v1269_v20 }
0x1552   :  { %2366 = vmatpush1.bf16.msra.mxu1 %v2635_v14 }
0x1553   :  { %2368 = vmatprep.subr.bf16.mxu1 %v2644_v17 }
0x1556   :  { %2370 = vmatpush1.bf16.msra.mxu1 %v2668_v24 }
0x1557   :  { %2372 = vmatprep.subr.bf16.mxu1 %v2671_v25 }
0x155a   :  { %2374 = vmatpush1.bf16.msra.mxu1 %v2680_v28 }
0x155b   :  { %2397 = vmatprep.subr.bf16.mxu1 %v2538_v49 }
0x1620   :  { %v1260_v22 = vpop.f32.mrb[8].mxu1 }
0x1621   :  { %v1272_v26 = vadd.f32 %v1270_v21, %v1260_v22  ;;  %v2204_v27 = vpop.f32.mrb[9].mxu1  ;;  %v1280_v39 = vadd.f32 %v2793_v23, %v1260_v22 }
0x1623   :  { %v1273_v30 = vadd.f32 %v2793_v23, %v1272_v26 }
0x1625   :  { %v2067_v32 = vmul.f32 -1.442695, %v1273_v30 }
0x1627   :  { %2491 = vpow2.f32 %v2067_v32 }
0x1631   :  { %v2492_v33 = vpop.eup %2491 }
0x1632   :  { %v1277_v34 = vadd.f32 1.0, %v2492_v33 }
0x1634   :  { %2493 = vrcp.f32 %v1277_v34 }
0x163e   :  { %v2494_v36 = vpop.eup %2493 }
0x163f   :  { %v1286_v38 = vmul.f32 %v2494_v36, %v1284_v37  ;;  %v1293_v43 = vsub.f32 1.0, %v2494_v36  ;;  %v1299_v46 = vmul.f32 %v2494_v36, %v2925_v51 }
0x1641   :  { %1288 = vrot.lane.b32.xlu1 %v1286_v38, %s2536_s28 }
0x16b3   :  { %v1289_v40 = vpop.permute.xlu1 %1288 }
0x16b4   :  { %v1291_v41 = vadd.f32 %v1289_v40, %v1280_v39 }
0x16b6   :  { %2495 = vtanh.f32 %v1291_v41 }
0x16c0   :  { %v2496_v42 = vpop.eup %2495 }
0x16c1   :  { %1295 = vrot.lane.b32.xlu0 %v2496_v42, %s2537_s17 }
0x1733   :  { %v1296_v44 = vpop.permute.xlu0 %1295 }
0x1734   :  { %v1298_v47 = vmul.f32 %v1296_v44, %v1293_v43 }
0x1736   :  { %v2967_v50 = vadd.f32 %v1299_v46, %v1298_v47 }
0x1738   :  { %v1302_v48 = vsel %vm328_vm2, %v1191_v18, %v2967_v50 }
0x1739   :  { %2068 = vmatmul.mubr.msk.f32.vlgmr.msra.gmra.mrb[10].mxu1 %vm220_vm3, %v1302_v48 }
0x173a   :  { %2399 = vmatpush3.bf16.msra.mxu1 %v2727_v54  ;;  %2224 = vmatprep.mubr.msk.f32.mxu1 %vm2540_vm1, %v2535_v3 }
0x173b   :  { %2400 = vmatprep.subr.bf16.mxu1 %v2538_v49 }
0x173e   :  { %2402 = vmatpush3.bf16.msra.mxu1 %v2743_v58 }
0x173f   :  { %2404 = vmatprep.subr.bf16.mxu1 %v2606_v4 }
0x180c   :  { %v1372_v51 = vpop.f32.mrb[10].mxu1 }
0x180d   :  { %v1384_v45 = vadd.f32 %v1372_v51, %v2696_v31  ;;  %v1374_v52 = vpop.f32.mrb[11].mxu1  ;;  %v1377_v55 = vadd.f32 %v1372_v51, %v207_v53 }
0x180e   :  { %v1496_v10 = vadd.f32 %v1374_v52, %v2765_v2 }
0x180f   :  { %1386 = vrot.lane.b32.xlu1 %v1384_v45, %s2536_s28  ;;  %v2069_v56 = vmul.f32 -1.442695, %v1377_v55 }
0x1811   :  { %2497 = vpow2.f32 %v2069_v56 }
0x181b   :  { %v2498_v57 = vpop.eup %2497 }
0x181c   :  { %v1381_v59 = vadd.f32 1.0, %v2498_v57 }
0x181e   :  { %2499 = vrcp.f32 %v1381_v59 }
0x1828   :  { %v2500_v60 = vpop.eup %2499 }
0x1829   :  { %v1396_v0 = vsub.f32 1.0, %v2500_v60  ;;  %v1402_v11 = vmul.f32 %v2500_v60, %v2946_v19 }
0x1881   :  { %v1387_v61 = vpop.permute.xlu1 %1386 }
0x1882   :  { %v1389_v62 = vmul.f32 %v2500_v60, %v1387_v61 }
0x1884   :  { %1391 = vrot.lane.b32.xlu0 %v1389_v62, %s2536_s28 }
0x18f6   :  { %v1392_v4 = vpop.permute.xlu0 %1391 }
0x18f7   :  { %v1394_v63 = vadd.f32 %v1392_v4, %v207_v53 }
0x18f9   :  { %2501 = vtanh.f32 %v1394_v63 }
0x1903   :  { %v2502_v29 = vpop.eup %2501 }
0x1904   :  { %1398 = vrot.lane.b32.xlu1 %v2502_v29, %s2537_s17 }
0x1908   :  { %1481 = vrot.lane.b32.xlu1 %v1372_v51, %s2539_s11  ;;  %v212_v51 = vadd.f32 %v2703_v35, %v2780_v13 }
0x190c   :  { %1498 = vrot.lane.b32.xlu1 %v1496_v10, %s2537_s17 }
0x1976   :  { %v1399_v7 = vpop.permute.xlu1 %1398 }
0x1977   :  { %v1401_v6 = vmul.f32 %v1399_v7, %v1396_v0 }
0x1979   :  { %v2988_v5 = vadd.f32 %v1402_v11, %v1401_v6 }
0x197a   :  { %v1482_v19 = vpop.permute.xlu1 %1481 }
0x197b   :  { %1405 = vrot.lane.b32.xlu0 %v2988_v5, %s2537_s17 }
0x197e   :  { %v1499_v33 = vpop.permute.xlu1 %1498 }
0x197f   :  { %1483 = vrot.lane.b32.xlu0 %v1374_v52, %s2539_s11 }
0x19ed   :  { %v1406_v15 = vpop.permute.xlu0 %1405 }
0x19ee   :  { %2214 = vmatmul.mubr.msk.f32.vlgmr.msra.gmra.mrb[18].mxu0 %vm328_vm2, %v1406_v15 }
0x19ef   :  { %2384 = vmatpush1.bf16.msra.mxu0 %v2617_v8  ;;  %1585 = vmatprep.mubr.f32.mxu0 %v2535_v3 }
0x19f0   :  { %2386 = vmatprep.subr.bf16.mxu0 %v2619_v9 }
0x19f1   :  { %v1484_v16 = vpop.permute.xlu0 %1483 }
0x19f2   :  { %v1485_v18 = vsel %vm328_vm2, %v1482_v19, %v1484_v16 }
0x19f3   :  { %2388 = vmatpush1.bf16.msra.mxu0 %v2635_v14 }
0x19f4   :  { %2390 = vmatprep.subr.bf16.mxu0 %v2644_v17 }
0x19f7   :  { %2392 = vmatpush1.bf16.msra.mxu0 %v2668_v24 }
0x19f8   :  { %2394 = vmatprep.subr.bf16.mxu0 %v2671_v25 }
0x19fb   :  { %2396 = vmatpush1.bf16.msra.mxu0 %v2680_v28 }
0x19fc   :  { %2419 = vmatprep.subr.bf16.mxu0 %v2538_v49 }
0x1ac1   :  { %v1475_v20 = vpop.f32.mrb[18].mxu0 }
0x1ac2   :  { %v1487_v1 = vadd.f32 %v1485_v18, %v1475_v20  ;;  %v2215_v21 = vpop.f32.mrb[19].mxu0  ;;  %v1495_v36 = vadd.f32 %v2793_v23, %v1475_v20 }
0x1ac4   :  { %v1488_v22 = vadd.f32 %v2793_v23, %v1487_v1 }
0x1ac6   :  { %v2071_v26 = vmul.f32 -1.442695, %v1488_v22 }
0x1ac8   :  { %2503 = vpow2.f32 %v2071_v26 }
0x1ad2   :  { %v2504_v27 = vpop.eup %2503 }
0x1ad3   :  { %v1492_v30 = vadd.f32 1.0, %v2504_v27 }
0x1ad5   :  { %2505 = vrcp.f32 %v1492_v30 }
0x1adf   :  { %v2506_v32 = vpop.eup %2505 }
0x1ae0   :  { %v1501_v34 = vmul.f32 %v2506_v32, %v1499_v33  ;;  %v1508_v40 = vsub.f32 1.0, %v2506_v32  ;;  %v1514_v42 = vmul.f32 %v2506_v32, %v2967_v50  ;;  %v2533_v33 = vld [vmem:[%s3104_s3] ss:$0 sm:$0xff] }
0x1ae2   :  { %1503 = vrot.lane.b32.xlu0 %v1501_v34, %s2536_s28  ;;  %v217_v34 = vadd.f32 %v2533_v33, %v2778_v12 }
0x1b54   :  { %v1504_v37 = vpop.permute.xlu0 %1503 }
0x1b55   :  { %v1506_v38 = vadd.f32 %v1504_v37, %v1495_v36 }
0x1b57   :  { %2507 = vtanh.f32 %v1506_v38 }
0x1b61   :  { %v2508_v39 = vpop.eup %2507 }
0x1b62   :  { %1510 = vrot.lane.b32.xlu1 %v2508_v39, %s2537_s17 }
0x1bd4   :  { %v1511_v41 = vpop.permute.xlu1 %1510 }
0x1bd5   :  { %v1513_v43 = vmul.f32 %v1511_v41, %v1508_v40 }
0x1bd7   :  { %v3009_v44 = vadd.f32 %v1514_v42, %v1513_v43 }
0x1bd9   :  { %v1517_v46 = vsel %vm328_vm2, %v1406_v15, %v3009_v44 }
0x1bda   :  { %2072 = vmatmul.mubr.msk.f32.vlgmr.msra.gmra.mrb[20].mxu0 %vm220_vm3, %v1517_v46 }
0x1bdb   :  { %2421 = vmatpush3.bf16.msra.mxu0 %v2727_v54  ;;  %2235 = vmatprep.mubr.msk.f32.mxu0 %vm2540_vm1, %v2535_v3 }
0x1bdc   :  { %2422 = vmatprep.subr.bf16.mxu0 %v2538_v49 }
0x1bdf   :  { %2424 = vmatpush3.bf16.msra.mxu0 %v2743_v58 }
0x1be0   :  { %2425 = vmatprep.subr.bf16.mxu0 %v2538_v49 }
0x1cad   :  { %v1587_v47 = vpop.f32.mrb[20].mxu0 }
0x1cae   :  { %v1599_v50 = vadd.f32 %v1587_v47, %v2696_v31  ;;  %v1589_v48 = vpop.f32.mrb[21].mxu0  ;;  %v1592_v45 = vadd.f32 %v1587_v47, %v212_v51 }
0x1caf   :  { %v1711_v35 = vadd.f32 %v1589_v48, %v2765_v2 }
0x1cb0   :  { %1601 = vrot.lane.b32.xlu0 %v1599_v50, %s2536_s28  ;;  %v2073_v54 = vmul.f32 -1.442695, %v1592_v45 }
0x1cb2   :  { %2509 = vpow2.f32 %v2073_v54 }
0x1cbc   :  { %v2510_v52 = vpop.eup %2509 }
0x1cbd   :  { %v1596_v53 = vadd.f32 1.0, %v2510_v52 }
0x1cbf   :  { %2511 = vrcp.f32 %v1596_v53 }
0x1cc9   :  { %v2512_v55 = vpop.eup %2511 }
0x1cca   :  { %v1611_v13 = vsub.f32 1.0, %v2512_v55  ;;  %v1617_v62 = vmul.f32 %v2512_v55, %v2988_v5 }
0x1d22   :  { %v1602_v56 = vpop.permute.xlu0 %1601 }
0x1d23   :  { %v1604_v58 = vmul.f32 %v2512_v55, %v1602_v56 }
0x1d25   :  { %1606 = vrot.lane.b32.xlu1 %v1604_v58, %s2536_s28  ;;  %v2534_v58 = vld [vmem:[%s3107_s6] ss:$0 sm:$0xff] }
0x1d97   :  { %v1607_v57 = vpop.permute.xlu1 %1606 }
0x1d98   :  { %v1609_v59 = vadd.f32 %v1607_v57, %v212_v51 }
0x1d9a   :  { %2513 = vtanh.f32 %v1609_v59 }
0x1da4   :  { %v2514_v60 = vpop.eup %2513 }
0x1da5   :  { %1613 = vrot.lane.b32.xlu0 %v2514_v60, %s2537_s17 }
0x1da9   :  { %1696 = vrot.lane.b32.xlu0 %v1587_v47, %s2539_s11 }
0x1dad   :  { %1713 = vrot.lane.b32.xlu0 %v1711_v35, %s2537_s17 }
0x1e17   :  { %v1614_v61 = vpop.permute.xlu0 %1613 }
0x1e18   :  { %v1616_v4 = vmul.f32 %v1614_v61, %v1611_v13 }
0x1e1a   :  { %v3030_v63 = vadd.f32 %v1617_v62, %v1616_v4 }
0x1e1b   :  { %v1697_v0 = vpop.permute.xlu0 %1696 }
0x1e1c   :  { %1620 = vrot.lane.b32.xlu1 %v3030_v63, %s2537_s17 }
0x1e20   :  { %1698 = vrot.lane.b32.xlu1 %v1589_v48, %s2539_s11 }
0x1e8e   :  { %v1621_v29 = vpop.permute.xlu1 %1620 }
0x1e8f   :  { %2225 = vmatmul.mubr.msk.f32.vlgmr.msra.gmra.mrb[12].mxu1 %vm328_vm2, %v1621_v29 }
0x1e90   :  { %2406 = vmatpush1.bf16.msra.mxu1 %v2617_v8  ;;  %1800 = vmatprep.mubr.f32.mxu1 %v2535_v3 }
0x1e91   :  { %2408 = vmatprep.subr.bf16.mxu1 %v2619_v9 }
0x1e92   :  { %v1699_v10 = vpop.permute.xlu1 %1698 }
0x1e93   :  { %v1700_v7 = vsel %vm328_vm2, %v1697_v0, %v1699_v10  ;;  %v1947_v10 = vld [vmem:[%s3108_s8 + $0x8] sm:$0xff]  ;;  %v1948_v0 = vld [vmem:[%s3108_s8 + $0x10] sm:$0xff] }
0x1e94   :  { %2410 = vmatpush1.bf16.msra.mxu1 %v2635_v14 }
0x1e95   :  { %2412 = vmatprep.subr.bf16.mxu1 %v2644_v17 }
0x1e98   :  { %2414 = vmatpush1.bf16.msra.mxu1 %v2668_v24  ;;  %v1714_v24 = vpop.permute.xlu0 %1713 }
0x1e99   :  { %2416 = vmatprep.subr.bf16.mxu1 %v2671_v25 }
0x1e9c   :  { %2418 = vmatpush1.bf16.msra.mxu1 %v2680_v28 }
0x1f62   :  { %v1690_v11 = vpop.f32.mrb[12].mxu1 }
0x1f63   :  { %v1702_v8 = vadd.f32 %v1700_v7, %v1690_v11  ;;  %v2226_v6 = vpop.f32.mrb[13].mxu1  ;;  %v1710_v25 = vadd.f32 %v2793_v23, %v1690_v11  ;;  %v1949_v11 = vld [vmem:[%s3108_s8 + $0x18] sm:$0xff] }
0x1f65   :  { %v1703_v5 = vadd.f32 %v2793_v23, %v1702_v8  ;;  %v2429_v8 = vpack.c.bf16 %v1949_v11, %v1948_v0 }
0x1f67   :  { %v2075_v9 = vmul.f32 -1.442695, %v1703_v5 }
0x1f69   :  { %2515 = vpow2.f32 %v2075_v9 }
0x1f73   :  { %v2516_v14 = vpop.eup %2515 }
0x1f74   :  { %v1707_v15 = vadd.f32 1.0, %v2516_v14 }
0x1f76   :  { %2517 = vrcp.f32 %v1707_v15 }
0x1f80   :  { %v2518_v17 = vpop.eup %2517 }
0x1f81   :  { %v1716_v16 = vmul.f32 %v2518_v17, %v1714_v24  ;;  %v1723_v20 = vsub.f32 1.0, %v2518_v17  ;;  %v1729_v21 = vmul.f32 %v2518_v17, %v3009_v44 }
0x1f83   :  { %1718 = vrot.lane.b32.xlu1 %v1716_v16, %s2536_s28  ;;  %v2080_v16 = vld [vmem:[%s3109_s9] ss:$0 sm:$0xff] }
0x1ff5   :  { %v1719_v28 = vpop.permute.xlu1 %1718 }
0x1ff6   :  { %v1721_v19 = vadd.f32 %v1719_v28, %v1710_v25 }
0x1ff8   :  { %2519 = vtanh.f32 %v1721_v19 }
0x2002   :  { %v2520_v18 = vpop.eup %2519 }
0x2003   :  { %1725 = vrot.lane.b32.xlu0 %v2520_v18, %s2537_s17 }
0x2075   :  { %v1726_v1 = vpop.permute.xlu0 %1725 }
0x2076   :  { %v1728_v22 = vmul.f32 %v1726_v1, %v1723_v20 }
0x2078   :  { %v3050_v26 = vadd.f32 %v1729_v21, %v1728_v22 }
0x207a   :  { %v1732_v27 = vsel %vm328_vm2, %v1621_v29, %v3050_v26  ;;  %v1946_v29 = vld [vmem:[%s3108_s8] sm:$0xff] }
0x207b   :  { %2076 = vmatmul.mubr.msk.f32.vlgmr.msra.gmra.mrb[14].mxu1 %vm220_vm3, %v1732_v27  ;;  %v2426_v7 = vpack.c.bf16 %v1947_v10, %v1946_v29 }
0x214e   :  { %v1802_v30 = vpop.f32.mrb[14].mxu1 }
0x214f   :  { %v1814_v23 = vadd.f32 %v1802_v30, %v2696_v31  ;;  %v1804_v32 = vpop.f32.mrb[15].mxu1  ;;  %v1807_v36 = vadd.f32 %v1802_v30, %v217_v34 }
0x2150   :  { %v1926_v12 = vadd.f32 %v1804_v32, %v2765_v2 }
0x2151   :  { %1816 = vrot.lane.b32.xlu1 %v1814_v23, %s2536_s28  ;;  %v2077_v37 = vmul.f32 -1.442695, %v1807_v36 }
0x2153   :  { %2521 = vpow2.f32 %v2077_v37 }
0x215d   :  { %v2522_v38 = vpop.eup %2521 }
0x215e   :  { %v1811_v39 = vadd.f32 1.0, %v2522_v38 }
0x2160   :  { %2523 = vrcp.f32 %v1811_v39 }
0x216a   :  { %v2524_v40 = vpop.eup %2523 }
0x216b   :  { %v1826_v46 = vsub.f32 1.0, %v2524_v40  ;;  %v1832_v50 = vmul.f32 %v2524_v40, %v3030_v63 }
0x21c3   :  { %v1817_v41 = vpop.permute.xlu1 %1816 }
0x21c4   :  { %v1819_v42 = vmul.f32 %v2524_v40, %v1817_v41 }
0x21c6   :  { %1821 = vrot.lane.b32.xlu0 %v1819_v42, %s2536_s28 }
0x2238   :  { %v1822_v31 = vpop.permute.xlu0 %1821 }
0x2239   :  { %v1824_v43 = vadd.f32 %v1822_v31, %v217_v34 }
0x223b   :  { %2525 = vtanh.f32 %v1824_v43 }
0x2245   :  { %v2526_v44 = vpop.eup %2525 }
0x2246   :  { %1828 = vrot.lane.b32.xlu1 %v2526_v44, %s2537_s17 }
0x224a   :  { %1911 = vrot.lane.b32.xlu1 %v1802_v30, %s2539_s11 }
0x224e   :  { %1928 = vrot.lane.b32.xlu1 %v1926_v12, %s2537_s17 }
0x22b8   :  { %v1829_v47 = vpop.permute.xlu1 %1828 }
0x22b9   :  { %v1831_v48 = vmul.f32 %v1829_v47, %v1826_v46 }
0x22bb   :  { %v1833_v51 = vadd.f32 %v1832_v50, %v1831_v48 }
0x22bc   :  { %v1912_v2 = vpop.permute.xlu1 %1911 }
0x22bd   :  { %1835 = vrot.lane.b32.xlu0 %v1833_v51, %s2537_s17 }
0x22c0   :  { %v1929_v61 = vpop.permute.xlu1 %1928 }
0x22c1   :  { %1913 = vrot.lane.b32.xlu0 %v1804_v32, %s2539_s11 }
0x232f   :  { %v1836_v45 = vpop.permute.xlu0 %1835 }
0x2330   :  { %2236 = vmatmul.mubr.msk.f32.vlgmr.msra.gmra.mrb[22].mxu0 %vm328_vm2, %v1836_v45 }
0x2331   :  { %2246 = vmatprep.mubr.msk.f32.mxu0 %vm2540_vm1, %v2535_v3  ;;  %2427 = vmatpush3.bf16.msra.mxu0 %v2426_v7 }
0x2332   :  { %2428 = vmatprep.subr.bf16.mxu0 %v2538_v49 }
0x2333   :  { %v1914_v54 = vpop.permute.xlu0 %1913 }
0x2334   :  { %v1915_v52 = vsel %vm328_vm2, %v1912_v2, %v1914_v54 }
0x2335   :  { %2430 = vmatpush3.bf16.msra.mxu0 %v2429_v8 }
0x2403   :  { %v1905_v53 = vpop.f32.mrb[22].mxu0 }
0x2404   :  { %v1917_v55 = vadd.f32 %v1915_v52, %v1905_v53  ;;  %v2237_v56 = vpop.f32.mrb[23].mxu0  ;;  %v1925_v62 = vadd.f32 %v2534_v58, %v1905_v53 }
0x2406   :  { %v1918_v57 = vadd.f32 %v2534_v58, %v1917_v55 }
0x2408   :  { %v2079_v59 = vmul.f32 -1.442695, %v1918_v57 }
0x240a   :  { %2527 = vpow2.f32 %v2079_v59 }
0x2414   :  { %v2528_v60 = vpop.eup %2527 }
0x2415   :  { %v1922_v35 = vadd.f32 1.0, %v2528_v60 }
0x2417   :  { %2529 = vrcp.f32 %v1922_v35 }
0x2421   :  { %v2530_v13 = vpop.eup %2529 }
0x2422   :  { %v1931_v3 = vmul.f32 %v2530_v13, %v1929_v61  ;;  %v1938_v5 = vsub.f32 1.0, %v2530_v13  ;;  %v1944_v14 = vmul.f32 %v2530_v13, %v3050_v26 }
0x2424   :  { %1933 = vrot.lane.b32.xlu0 %v1931_v3, %s2536_s28 }
0x2496   :  { %v1934_v4 = vpop.permute.xlu0 %1933 }
0x2497   :  { %v1936_v63 = vadd.f32 %v1934_v4, %v1925_v62 }
0x2499   :  { %2531 = vtanh.f32 %v1936_v63 }
0x24a3   :  { %v2532_v6 = vpop.eup %2531 }
0x24a4   :  { %1940 = vrot.lane.b32.xlu1 %v2532_v6, %s2537_s17 }
0x2516   :  { %v1941_v9 = vpop.permute.xlu1 %1940 }
0x2517   :  { %v1943_v15 = vmul.f32 %v1941_v9, %v1938_v5 }
0x2519   :  { %v1945_v17 = vadd.f32 %v1944_v14, %v1943_v15 }
0x251b   :  { %1958 = vrot.lane.b32.xlu0 %v1945_v17, %s2537_s17 }
0x258d   :  { %v1959_v24 = vpop.permute.xlu0 %1958 }
0x258e   :  { %2247 = vmatmul.mubr.msk.f32.vlgmr.msra.gmra.mrb[24].mxu0 %vm328_vm2, %v1959_v24 }
0x2661   :  { %v2028_v49 = vpop.f32.mrb[24].mxu0 }
0x2662   :  { %v2029_v25 = vadd.f32 %v2080_v16, %v2028_v49  ;;  %v2248_v28 = vpop.f32.mrb[25].mxu0 }
0x2664   :  { %2032 = vst [vmem:[%s3110_s10] sm:$0xff] %v2029_v25 }

</bundles_post_ra>
